<compile_context>
chip_gen: v7x
topology: tpu7x:2x2x1
jax: 0.10.0
libtpu: 0.0.40
codegen_flags: <defaults>
</compile_context>

<pallas_src>
import jax
import jax.numpy as jnp
from jax import lax
from jax.experimental import pallas as pl
from jax.experimental.pallas import tpu as pltpu


def _round_up(n, m):
    return ((n + m - 1) // m) * m


# ----------------------- fused multi-layer LSTM + FC kernel -----------------------
def make_fused_lstm_kernel(L, T, Bp, H):
    """Single kernel: all LSTM layers (wavefront-pipelined) + FC head.

    Ref layout:
      refs[0]                x_ref     (T*Bp, Din)  time-major, batch-padded input
      refs[1+3l : 4+3l]      layer l:  w_ih_t (Din_l, 4H), w_hh_t (H, 4H), bias (1, 4H)
                             (gate order [i, f, o, g]; Din_0 = input_size, Din_{l>0} = H)
      refs[1+3L]             w_fc_t    (H, O)
      refs[2+3L]             b_fc      (1, O)
      refs[3+3L]             out_ref   (Bp, O)
      refs[4+3L]             xproj_sc  (T*Bp, 4H)   VMEM scratch (layer-0 batched projection)
    """
    G3 = 3 * H

    def kernel(*refs):
        x_ref = refs[0]
        layer_refs = [refs[1 + 3 * l:4 + 3 * l] for l in range(L)]
        w_fc_ref = refs[1 + 3 * L]
        b_fc_ref = refs[2 + 3 * L]
        out_ref = refs[3 + 3 * L]
        xproj_sc = refs[4 + 3 * L]

        # (1) Hoisted, batched non-recurrent projection for layer 0 (all T steps, bias folded).
        w_ih0_ref, w_hh0_ref, b0_ref = layer_refs[0]
        xproj_sc[...] = (
            jnp.dot(x_ref[...], w_ih0_ref[...], preferred_element_type=jnp.float32)
            + b0_ref[...]
        )

        # Loop-invariant weights / biases, hoisted out of the wavefront loop.
        whh = [layer_refs[l][1][...] for l in range(L)]
        wih = [None] + [layer_refs[l][0][...] for l in range(1, L)]
        bias = [None] + [layer_refs[l][2][...] for l in range(1, L)]

        def cell(gates, c):
            # Gate order [i, f, o | g]: one sigmoid slab + one tanh slab (2 EUP pushes).
            sig = jax.nn.sigmoid(gates[:, :G3])
            g_g = jnp.tanh(gates[:, G3:])
            i_g = sig[:, 0 * H:1 * H]
            f_g = sig[:, 1 * H:2 * H]
            o_g = sig[:, 2 * H:3 * H]
            c_new = f_g * c + i_g * g_g
            h_new = o_g * jnp.tanh(c_new)
            return h_new, c_new

        def wavefront_step(s, hs, cs, active):
            # Top-down so layer l reads layer l-1's value from the PREVIOUS wavefront step.
            hs, cs = list(hs), list(cs)
            for l in reversed(range(L)):
                if not active[l]:
                    continue
                if l == 0:
                    row = s * Bp
                    if not isinstance(s, int):
                        row = pl.multiple_of(row, Bp)   # Bp multiple of 8 -> aligned rows
                    gates = xproj_sc[pl.ds(row, Bp), :] + jnp.dot(
                        hs[0], whh[0], preferred_element_type=jnp.float32)
                else:
                    gates = (
                        jnp.dot(hs[l - 1], wih[l], preferred_element_type=jnp.float32)
                        + jnp.dot(hs[l], whh[l], preferred_element_type=jnp.float32)
                        + bias[l]
                    )
                hs[l], cs[l] = cell(gates, cs[l])
            return tuple(hs), tuple(cs)

        zeros = jnp.zeros((Bp, H), jnp.float32)
        hs = tuple(zeros for _ in range(L))
        cs = tuple(zeros for _ in range(L))

        S = T + L - 1  # total wavefront steps (serial depth: T+L-1 instead of L*T)

        # Prologue (static): not all layers live yet.
        for s in range(0, min(L - 1, S)):
            active = tuple((l <= s) and (s - l < T) for l in range(L))
            hs, cs = wavefront_step(s, hs, cs, active)

        # Interior (traced fori_loop): all layers live, no masking / clamping needed.
        lo, hi = L - 1, T
        if hi > lo:
            trip = hi - lo
            all_active = tuple(True for _ in range(L))

            def body(s, carry):
                hs_, cs_ = carry
                return wavefront_step(s, hs_, cs_, all_active)

            hs, cs = lax.fori_loop(lo, hi, body, (hs, cs),
                                   unroll=True if trip <= 16 else 8)

        # Epilogue (static): drain the upper layers.
        for s in range(max(T, L - 1), S):
            active = tuple((l <= s) and (s - l < T) for l in range(L))
            hs, cs = wavefront_step(s, hs, cs, active)

        # (3) FC head, fused: only the last layer's final hidden state is used.
        out_ref[...] = (
            jnp.dot(hs[L - 1], w_fc_ref[...], preferred_element_type=jnp.float32)
            + b_fc_ref[...]
        )

    return kernel


# -------------------------- kernel-layout param preparation --------------------------
def prepare_kernel_params(params):
    """PyTorch-layout params -> kernel layout: transpose + gate reorder [i,f,g,o]->[i,f,o,g]."""
    H = params["layers"][0][1].shape[1]
    perm = jnp.concatenate([jnp.arange(0, 2 * H),        # i, f
                            jnp.arange(3 * H, 4 * H),    # o
                            jnp.arange(2 * H, 3 * H)])   # g
    layers = []
    for (w_ih, w_hh, b_ih, b_hh) in params["layers"]:
        layers.append((jnp.transpose(w_ih)[:, perm],            # (Din, 4H)
                       jnp.transpose(w_hh)[:, perm],            # (H, 4H)
                       (b_ih + b_hh)[perm][None, :]))           # (1, 4H), fused bias
    return {"layers": layers,
            "w_fc_t": jnp.transpose(params["w_fc"]),            # (H, O)
            "b_fc": params["b_fc"][None, :]}                    # (1, O)


# ------------------------------ full forward pass -----------------------------
def lstm_model_forward(x, params):
    """x: (B, T, input_size) float32 -> (B, output_size) float32."""
    B, T, Din = x.shape
    kp = prepare_kernel_params(params)
    H = kp["layers"][0][1].shape[0]
    O = kp["w_fc_t"].shape[1]
    L = len(kp["layers"])

    # Pad batch to the f32 sublane tile (8); padded rows are independent and sliced off.
    Bp = _round_up(B, 8)
    if Bp != B:
        x = jnp.pad(x, ((0, Bp - B), (0, 0), (0, 0)))

    # Time-major flattened layout: row t*Bp + b holds (timestep t, batch b).
    x_tb = jnp.transpose(x, (1, 0, 2)).reshape(T * Bp, Din)

    flat_w = []
    for (w_ih_t, w_hh_t, bias) in kp["layers"]:
        flat_w += [w_ih_t, w_hh_t, bias]

    vmem = pl.BlockSpec(memory_space=pltpu.MemorySpace.VMEM)
    kernel = make_fused_lstm_kernel(L, T, Bp, H)

    # Size the scoped VMEM limit from the real footprint (inputs + scratch + output) with 2x
    # headroom; clamp to [16 MiB, 64 MiB] so v5e's small default doesn't bite and we never
    # request past v7x's 64 MiB physical VMEM.
    n_bytes = 4 * (x_tb.size
                   + sum(int(w.size) for w in flat_w)
                   + int(kp["w_fc_t"].size) + int(kp["b_fc"].size)
                   + T * Bp * 4 * H
                   + Bp * O)
    vmem_limit = int(min(64 << 20, max(2 * n_bytes, 16 << 20)))

    out = pl.pallas_call(
        kernel,
        out_shape=jax.ShapeDtypeStruct((Bp, O), jnp.float32),
        in_specs=[vmem] * (1 + len(flat_w) + 2),
        out_specs=vmem,
        scratch_shapes=[
            pltpu.VMEM((T * Bp, 4 * H), jnp.float32),   # layer-0 batched input projection
        ],
        compiler_params=pltpu.CompilerParams(vmem_limit_bytes=vmem_limit),
    )(x_tb, *flat_w, kp["w_fc_t"], kp["b_fc"])

    return out[:B]


# --------------------------- pure-JAX reference check --------------------------
def lstm_model_reference(x, params):
    """Mirror of PyTorch nn.LSTM (batch_first, zero init state) + fc on last timestep."""
    h_seq = x
    for (w_ih, w_hh, b_ih, b_hh) in params["layers"]:
        B, T, _ = h_seq.shape
        H = w_hh.shape[1]
        h = jnp.zeros((B, H), jnp.float32)
        c = jnp.zeros((B, H), jnp.float32)
        outs = []
        for t in range(T):
            gates = h_seq[:, t, :] @ w_ih.T + h @ w_hh.T + b_ih + b_hh
            i_g = jax.nn.sigmoid(gates[:, 0 * H:1 * H])
            f_g = jax.nn.sigmoid(gates[:, 1 * H:2 * H])
            g_g = jnp.tanh(gates[:, 2 * H:3 * H])
            o_g = jax.nn.sigmoid(gates[:, 3 * H:4 * H])
            c = f_g * c + i_g * g_g
            h = o_g * jnp.tanh(c)
            outs.append(h)
        h_seq = jnp.stack(outs, axis=1)
    return h_seq[:, -1, :] @ params["w_fc"].T + params["b_fc"]


# ------------------------------- param construction ----------------------------
def init_params(key, input_size, hidden_size, num_layers, output_size):
    """PyTorch-layout params with U(-1/sqrt(H), 1/sqrt(H)) init (mirrors nn.LSTM / nn.Linear)."""
    H = hidden_size
    bound = 1.0 / jnp.sqrt(jnp.float32(H))
    layers = []
    for layer in range(num_layers):
        d_in = input_size if layer == 0 else H
        key, k1, k2, k3, k4 = jax.random.split(key, 5)
        w_ih = jax.random.uniform(k1, (4 * H, d_in), jnp.float32, -bound, bound)
        w_hh = jax.random.uniform(k2, (4 * H, H), jnp.float32, -bound, bound)
        b_ih = jax.random.uniform(k3, (4 * H,), jnp.float32, -bound, bound)
        b_hh = jax.random.uniform(k4, (4 * H,), jnp.float32, -bound, bound)
        layers.append((w_ih, w_hh, b_ih, b_hh))
    key, k5, k6 = jax.random.split(key, 3)
    w_fc = jax.random.uniform(k5, (output_size, H), jnp.float32, -bound, bound)
    b_fc = jax.random.uniform(k6, (output_size,), jnp.float32, -bound, bound)
    return {"layers": layers, "w_fc": w_fc, "b_fc": b_fc}


if __name__ == "__main__":
    # Small shapes consistent with the module's forward.
    batch, seq = 2, 8
    input_size, hidden_size, num_layers, output_size = 16, 32, 2, 4

    key = jax.random.PRNGKey(0)
    key, kx = jax.random.split(key)
    x = jax.random.normal(kx, (batch, seq, input_size), jnp.float32)

    params = init_params(key, input_size, hidden_size, num_layers, output_size)

    out = lstm_model_forward(x, params)
    out = jax.block_until_ready(out)
    assert out.shape == (batch, output_size), out.shape

    ref = lstm_model_reference(x, params)
    assert jnp.allclose(out, ref, atol=2e-5, rtol=2e-5), (
        float(jnp.max(jnp.abs(out - ref)))
    )

    print("KERNEL_OK")
</pallas_src>

<mosaic_0001>
module attributes {stable_mosaic.version = 11 : i64} {
  func.func @kernel(%arg0: memref<64x16xf32, #tpu.memory_space<vmem>>, %arg1: memref<16x128xf32, #tpu.memory_space<vmem>>, %arg2: memref<32x128xf32, #tpu.memory_space<vmem>>, %arg3: memref<1x128xf32, #tpu.memory_space<vmem>>, %arg4: memref<32x128xf32, #tpu.memory_space<vmem>>, %arg5: memref<32x128xf32, #tpu.memory_space<vmem>>, %arg6: memref<1x128xf32, #tpu.memory_space<vmem>>, %arg7: memref<32x4xf32, #tpu.memory_space<vmem>>, %arg8: memref<1x4xf32, #tpu.memory_space<vmem>>, %arg9: memref<8x4xf32, #tpu.memory_space<vmem>>, %arg10: memref<64x128xf32, #tpu.memory_space<vmem>>) attributes {dimension_semantics = [], scalar_prefetch = 0 : i64, scratch_operands = 1 : i64, tpu.core_type = #tpu.core_type<tc>} {
    %c0 = arith.constant 0 : index
    %c0_0 = arith.constant 0 : index
    %0 = vector.load %arg0[%c0, %c0_0] : memref<64x16xf32, #tpu.memory_space<vmem>>, vector<64x16xf32>
    %c0_1 = arith.constant 0 : index
    %c0_2 = arith.constant 0 : index
    %1 = vector.load %arg1[%c0_1, %c0_2] : memref<16x128xf32, #tpu.memory_space<vmem>>, vector<16x128xf32>
    %cst = arith.constant dense<0.000000e+00> : vector<64x128xf32>
    %2 = tpu.matmul %0, %1, %cst {dimension_numbers = #tpu.dot_dimension_numbers<[1], [0], [0], [1], [0, 0, 1, 1], [], []>} : vector<64x16xf32>, vector<16x128xf32>, vector<64x128xf32> -> vector<64x128xf32>
    %c0_3 = arith.constant 0 : index
    %c0_4 = arith.constant 0 : index
    %3 = vector.load %arg3[%c0_3, %c0_4] : memref<1x128xf32, #tpu.memory_space<vmem>>, vector<1x128xf32>
    %4 = vector.broadcast %3 : vector<1x128xf32> to vector<64x128xf32>
    %5 = arith.addf %2, %4 : vector<64x128xf32>
    %c0_5 = arith.constant 0 : index
    %c0_6 = arith.constant 0 : index
    %6 = vector.load %arg10[%c0_5, %c0_6] : memref<64x128xf32, #tpu.memory_space<vmem>>, vector<64x128xf32>
    tpu.vector_store %arg10[%c0_5, %c0_6], %5 {strides = array<i32>} : memref<64x128xf32, #tpu.memory_space<vmem>>, vector<64x128xf32>,
    %c0_7 = arith.constant 0 : index
    %c0_8 = arith.constant 0 : index
    %7 = vector.load %arg2[%c0_7, %c0_8] : memref<32x128xf32, #tpu.memory_space<vmem>>, vector<32x128xf32>
    %c0_9 = arith.constant 0 : index
    %c0_10 = arith.constant 0 : index
    %8 = vector.load %arg5[%c0_9, %c0_10] : memref<32x128xf32, #tpu.memory_space<vmem>>, vector<32x128xf32>
    %c0_11 = arith.constant 0 : index
    %c0_12 = arith.constant 0 : index
    %9 = vector.load %arg4[%c0_11, %c0_12] : memref<32x128xf32, #tpu.memory_space<vmem>>, vector<32x128xf32>
    %c0_13 = arith.constant 0 : index
    %c0_14 = arith.constant 0 : index
    %10 = vector.load %arg6[%c0_13, %c0_14] : memref<1x128xf32, #tpu.memory_space<vmem>>, vector<1x128xf32>
    %cst_15 = arith.constant 0.000000e+00 : f32
    %11 = vector.broadcast %cst_15 : f32 to vector<8x32xf32>
    %c0_16 = arith.constant 0 : index
    %c0_17 = arith.constant 0 : index
    %12 = vector.load %arg10[%c0_16, %c0_17] : memref<64x128xf32, #tpu.memory_space<vmem>>, vector<8x128xf32>
    %cst_18 = arith.constant dense<0.000000e+00> : vector<8x128xf32>
    %13 = tpu.matmul %11, %7, %cst_18 {dimension_numbers = #tpu.dot_dimension_numbers<[1], [0], [0], [1], [0, 0, 1, 1], [], []>} : vector<8x32xf32>, vector<32x128xf32>, vector<8x128xf32> -> vector<8x128xf32>
    %14 = arith.addf %12, %13 : vector<8x128xf32>
    %15 = vector.extract_strided_slice %14 {offsets = [0, 0], sizes = [8, 96], strides = [1, 1]} : vector<8x128xf32> to vector<8x96xf32>
    %16 = arith.negf %15 : vector<8x96xf32>
    %17 = math.exp %16 : vector<8x96xf32>
    %cst_19 = arith.constant 1.000000e+00 : f32
    %18 = vector.broadcast %cst_19 : f32 to vector<8x96xf32>
    %19 = arith.addf %18, %17 : vector<8x96xf32>
    %20 = arith.divf %18, %19 : vector<8x96xf32>
    %21 = vector.extract_strided_slice %14 {offsets = [0, 96], sizes = [8, 32], strides = [1, 1]} : vector<8x128xf32> to vector<8x32xf32>
    %22 = math.tanh %21 : vector<8x32xf32>
    %23 = vector.extract_strided_slice %20 {offsets = [0, 0], sizes = [8, 32], strides = [1, 1]} : vector<8x96xf32> to vector<8x32xf32>
    %24 = vector.extract_strided_slice %20 {offsets = [0, 32], sizes = [8, 32], strides = [1, 1]} : vector<8x96xf32> to vector<8x32xf32>
    %25 = vector.extract_strided_slice %20 {offsets = [0, 64], sizes = [8, 32], strides = [1, 1]} : vector<8x96xf32> to vector<8x32xf32>
    %26 = arith.mulf %24, %11 : vector<8x32xf32>
    %27 = arith.mulf %23, %22 : vector<8x32xf32>
    %28 = arith.addf %26, %27 : vector<8x32xf32>
    %29 = math.tanh %28 : vector<8x32xf32>
    %30 = arith.mulf %25, %29 : vector<8x32xf32>
    %c1_i32 = arith.constant 1 : i32
    %cst_20 = arith.constant dense<0.000000e+00> : vector<8x128xf32>
    %31 = tpu.matmul %30, %9, %cst_20 {dimension_numbers = #tpu.dot_dimension_numbers<[1], [0], [0], [1], [0, 0, 1, 1], [], []>} : vector<8x32xf32>, vector<32x128xf32>, vector<8x128xf32> -> vector<8x128xf32>
    %cst_21 = arith.constant dense<0.000000e+00> : vector<8x128xf32>
    %32 = tpu.matmul %11, %8, %cst_21 {dimension_numbers = #tpu.dot_dimension_numbers<[1], [0], [0], [1], [0, 0, 1, 1], [], []>} : vector<8x32xf32>, vector<32x128xf32>, vector<8x128xf32> -> vector<8x128xf32>
    %33 = arith.addf %31, %32 : vector<8x128xf32>
    %34 = vector.broadcast %10 : vector<1x128xf32> to vector<8x128xf32>
    %35 = arith.addf %33, %34 : vector<8x128xf32>
    %36 = vector.extract_strided_slice %35 {offsets = [0, 0], sizes = [8, 96], strides = [1, 1]} : vector<8x128xf32> to vector<8x96xf32>
    %37 = arith.negf %36 : vector<8x96xf32>
    %38 = math.exp %37 : vector<8x96xf32>
    %cst_22 = arith.constant 1.000000e+00 : f32
    %39 = vector.broadcast %cst_22 : f32 to vector<8x96xf32>
    %40 = arith.addf %39, %38 : vector<8x96xf32>
    %41 = arith.divf %39, %40 : vector<8x96xf32>
    %42 = vector.extract_strided_slice %35 {offsets = [0, 96], sizes = [8, 32], strides = [1, 1]} : vector<8x128xf32> to vector<8x32xf32>
    %43 = math.tanh %42 : vector<8x32xf32>
    %44 = vector.extract_strided_slice %41 {offsets = [0, 0], sizes = [8, 32], strides = [1, 1]} : vector<8x96xf32> to vector<8x32xf32>
    %45 = vector.extract_strided_slice %41 {offsets = [0, 32], sizes = [8, 32], strides = [1, 1]} : vector<8x96xf32> to vector<8x32xf32>
    %46 = vector.extract_strided_slice %41 {offsets = [0, 64], sizes = [8, 32], strides = [1, 1]} : vector<8x96xf32> to vector<8x32xf32>
    %47 = arith.mulf %45, %11 : vector<8x32xf32>
    %48 = arith.mulf %44, %43 : vector<8x32xf32>
    %49 = arith.addf %47, %48 : vector<8x32xf32>
    %50 = math.tanh %49 : vector<8x32xf32>
    %51 = arith.mulf %46, %50 : vector<8x32xf32>
    %c8_i32 = arith.constant 8 : i32
    %52 = arith.muli %c1_i32, %c8_i32 : i32
    %53 = tpu.assume_multiple %52, 8 : i32
    %54 = arith.index_cast %53 : i32 to index
    %c0_23 = arith.constant 0 : index
    %55 = vector.load %arg10[%54, %c0_23] : memref<64x128xf32, #tpu.memory_space<vmem>>, vector<8x128xf32>
    %cst_24 = arith.constant dense<0.000000e+00> : vector<8x128xf32>
    %56 = tpu.matmul %30, %7, %cst_24 {dimension_numbers = #tpu.dot_dimension_numbers<[1], [0], [0], [1], [0, 0, 1, 1], [], []>} : vector<8x32xf32>, vector<32x128xf32>, vector<8x128xf32> -> vector<8x128xf32>
    %57 = arith.addf %55, %56 : vector<8x128xf32>
    %58 = vector.extract_strided_slice %57 {offsets = [0, 0], sizes = [8, 96], strides = [1, 1]} : vector<8x128xf32> to vector<8x96xf32>
    %59 = arith.negf %58 : vector<8x96xf32>
    %60 = math.exp %59 : vector<8x96xf32>
    %cst_25 = arith.constant 1.000000e+00 : f32
    %61 = vector.broadcast %cst_25 : f32 to vector<8x96xf32>
    %62 = arith.addf %61, %60 : vector<8x96xf32>
    %63 = arith.divf %61, %62 : vector<8x96xf32>
    %64 = vector.extract_strided_slice %57 {offsets = [0, 96], sizes = [8, 32], strides = [1, 1]} : vector<8x128xf32> to vector<8x32xf32>
    %65 = math.tanh %64 : vector<8x32xf32>
    %66 = vector.extract_strided_slice %63 {offsets = [0, 0], sizes = [8, 32], strides = [1, 1]} : vector<8x96xf32> to vector<8x32xf32>
    %67 = vector.extract_strided_slice %63 {offsets = [0, 32], sizes = [8, 32], strides = [1, 1]} : vector<8x96xf32> to vector<8x32xf32>
    %68 = vector.extract_strided_slice %63 {offsets = [0, 64], sizes = [8, 32], strides = [1, 1]} : vector<8x96xf32> to vector<8x32xf32>
    %69 = arith.mulf %67, %28 : vector<8x32xf32>
    %70 = arith.mulf %66, %65 : vector<8x32xf32>
    %71 = arith.addf %69, %70 : vector<8x32xf32>
    %72 = math.tanh %71 : vector<8x32xf32>
    %73 = arith.mulf %68, %72 : vector<8x32xf32>
    %c2_i32 = arith.constant 2 : i32
    %cst_26 = arith.constant dense<0.000000e+00> : vector<8x128xf32>
    %74 = tpu.matmul %73, %9, %cst_26 {dimension_numbers = #tpu.dot_dimension_numbers<[1], [0], [0], [1], [0, 0, 1, 1], [], []>} : vector<8x32xf32>, vector<32x128xf32>, vector<8x128xf32> -> vector<8x128xf32>
    %cst_27 = arith.constant dense<0.000000e+00> : vector<8x128xf32>
    %75 = tpu.matmul %51, %8, %cst_27 {dimension_numbers = #tpu.dot_dimension_numbers<[1], [0], [0], [1], [0, 0, 1, 1], [], []>} : vector<8x32xf32>, vector<32x128xf32>, vector<8x128xf32> -> vector<8x128xf32>
    %76 = arith.addf %74, %75 : vector<8x128xf32>
    %77 = vector.broadcast %10 : vector<1x128xf32> to vector<8x128xf32>
    %78 = arith.addf %76, %77 : vector<8x128xf32>
    %79 = vector.extract_strided_slice %78 {offsets = [0, 0], sizes = [8, 96], strides = [1, 1]} : vector<8x128xf32> to vector<8x96xf32>
    %80 = arith.negf %79 : vector<8x96xf32>
    %81 = math.exp %80 : vector<8x96xf32>
    %cst_28 = arith.constant 1.000000e+00 : f32
    %82 = vector.broadcast %cst_28 : f32 to vector<8x96xf32>
    %83 = arith.addf %82, %81 : vector<8x96xf32>
    %84 = arith.divf %82, %83 : vector<8x96xf32>
    %85 = vector.extract_strided_slice %78 {offsets = [0, 96], sizes = [8, 32], strides = [1, 1]} : vector<8x128xf32> to vector<8x32xf32>
    %86 = math.tanh %85 : vector<8x32xf32>
    %87 = vector.extract_strided_slice %84 {offsets = [0, 0], sizes = [8, 32], strides = [1, 1]} : vector<8x96xf32> to vector<8x32xf32>
    %88 = vector.extract_strided_slice %84 {offsets = [0, 32], sizes = [8, 32], strides = [1, 1]} : vector<8x96xf32> to vector<8x32xf32>
    %89 = vector.extract_strided_slice %84 {offsets = [0, 64], sizes = [8, 32], strides = [1, 1]} : vector<8x96xf32> to vector<8x32xf32>
    %90 = arith.mulf %88, %49 : vector<8x32xf32>
    %91 = arith.mulf %87, %86 : vector<8x32xf32>
    %92 = arith.addf %90, %91 : vector<8x32xf32>
    %93 = math.tanh %92 : vector<8x32xf32>
    %94 = arith.mulf %89, %93 : vector<8x32xf32>
    %c8_i32_29 = arith.constant 8 : i32
    %95 = arith.muli %c2_i32, %c8_i32_29 : i32
    %96 = tpu.assume_multiple %95, 8 : i32
    %97 = arith.index_cast %96 : i32 to index
    %c0_30 = arith.constant 0 : index
    %98 = vector.load %arg10[%97, %c0_30] : memref<64x128xf32, #tpu.memory_space<vmem>>, vector<8x128xf32>
    %cst_31 = arith.constant dense<0.000000e+00> : vector<8x128xf32>
    %99 = tpu.matmul %73, %7, %cst_31 {dimension_numbers = #tpu.dot_dimension_numbers<[1], [0], [0], [1], [0, 0, 1, 1], [], []>} : vector<8x32xf32>, vector<32x128xf32>, vector<8x128xf32> -> vector<8x128xf32>
    %100 = arith.addf %98, %99 : vector<8x128xf32>
    %101 = vector.extract_strided_slice %100 {offsets = [0, 0], sizes = [8, 96], strides = [1, 1]} : vector<8x128xf32> to vector<8x96xf32>
    %102 = arith.negf %101 : vector<8x96xf32>
    %103 = math.exp %102 : vector<8x96xf32>
    %cst_32 = arith.constant 1.000000e+00 : f32
    %104 = vector.broadcast %cst_32 : f32 to vector<8x96xf32>
    %105 = arith.addf %104, %103 : vector<8x96xf32>
    %106 = arith.divf %104, %105 : vector<8x96xf32>
    %107 = vector.extract_strided_slice %100 {offsets = [0, 96], sizes = [8, 32], strides = [1, 1]} : vector<8x128xf32> to vector<8x32xf32>
    %108 = math.tanh %107 : vector<8x32xf32>
    %109 = vector.extract_strided_slice %106 {offsets = [0, 0], sizes = [8, 32], strides = [1, 1]} : vector<8x96xf32> to vector<8x32xf32>
    %110 = vector.extract_strided_slice %106 {offsets = [0, 32], sizes = [8, 32], strides = [1, 1]} : vector<8x96xf32> to vector<8x32xf32>
    %111 = vector.extract_strided_slice %106 {offsets = [0, 64], sizes = [8, 32], strides = [1, 1]} : vector<8x96xf32> to vector<8x32xf32>
    %112 = arith.mulf %110, %71 : vector<8x32xf32>
    %113 = arith.mulf %109, %108 : vector<8x32xf32>
    %114 = arith.addf %112, %113 : vector<8x32xf32>
    %115 = math.tanh %114 : vector<8x32xf32>
    %116 = arith.mulf %111, %115 : vector<8x32xf32>
    %c3_i32 = arith.constant 3 : i32
    %cst_33 = arith.constant dense<0.000000e+00> : vector<8x128xf32>
    %117 = tpu.matmul %116, %9, %cst_33 {dimension_numbers = #tpu.dot_dimension_numbers<[1], [0], [0], [1], [0, 0, 1, 1], [], []>} : vector<8x32xf32>, vector<32x128xf32>, vector<8x128xf32> -> vector<8x128xf32>
    %cst_34 = arith.constant dense<0.000000e+00> : vector<8x128xf32>
    %118 = tpu.matmul %94, %8, %cst_34 {dimension_numbers = #tpu.dot_dimension_numbers<[1], [0], [0], [1], [0, 0, 1, 1], [], []>} : vector<8x32xf32>, vector<32x128xf32>, vector<8x128xf32> -> vector<8x128xf32>
    %119 = arith.addf %117, %118 : vector<8x128xf32>
    %120 = vector.broadcast %10 : vector<1x128xf32> to vector<8x128xf32>
    %121 = arith.addf %119, %120 : vector<8x128xf32>
    %122 = vector.extract_strided_slice %121 {offsets = [0, 0], sizes = [8, 96], strides = [1, 1]} : vector<8x128xf32> to vector<8x96xf32>
    %123 = arith.negf %122 : vector<8x96xf32>
    %124 = math.exp %123 : vector<8x96xf32>
    %cst_35 = arith.constant 1.000000e+00 : f32
    %125 = vector.broadcast %cst_35 : f32 to vector<8x96xf32>
    %126 = arith.addf %125, %124 : vector<8x96xf32>
    %127 = arith.divf %125, %126 : vector<8x96xf32>
    %128 = vector.extract_strided_slice %121 {offsets = [0, 96], sizes = [8, 32], strides = [1, 1]} : vector<8x128xf32> to vector<8x32xf32>
    %129 = math.tanh %128 : vector<8x32xf32>
    %130 = vector.extract_strided_slice %127 {offsets = [0, 0], sizes = [8, 32], strides = [1, 1]} : vector<8x96xf32> to vector<8x32xf32>
    %131 = vector.extract_strided_slice %127 {offsets = [0, 32], sizes = [8, 32], strides = [1, 1]} : vector<8x96xf32> to vector<8x32xf32>
    %132 = vector.extract_strided_slice %127 {offsets = [0, 64], sizes = [8, 32], strides = [1, 1]} : vector<8x96xf32> to vector<8x32xf32>
    %133 = arith.mulf %131, %92 : vector<8x32xf32>
    %134 = arith.mulf %130, %129 : vector<8x32xf32>
    %135 = arith.addf %133, %134 : vector<8x32xf32>
    %136 = math.tanh %135 : vector<8x32xf32>
    %137 = arith.mulf %132, %136 : vector<8x32xf32>
    %c8_i32_36 = arith.constant 8 : i32
    %138 = arith.muli %c3_i32, %c8_i32_36 : i32
    %139 = tpu.assume_multiple %138, 8 : i32
    %140 = arith.index_cast %139 : i32 to index
    %c0_37 = arith.constant 0 : index
    %141 = vector.load %arg10[%140, %c0_37] : memref<64x128xf32, #tpu.memory_space<vmem>>, vector<8x128xf32>
    %cst_38 = arith.constant dense<0.000000e+00> : vector<8x128xf32>
    %142 = tpu.matmul %116, %7, %cst_38 {dimension_numbers = #tpu.dot_dimension_numbers<[1], [0], [0], [1], [0, 0, 1, 1], [], []>} : vector<8x32xf32>, vector<32x128xf32>, vector<8x128xf32> -> vector<8x128xf32>
    %143 = arith.addf %141, %142 : vector<8x128xf32>
    %144 = vector.extract_strided_slice %143 {offsets = [0, 0], sizes = [8, 96], strides = [1, 1]} : vector<8x128xf32> to vector<8x96xf32>
    %145 = arith.negf %144 : vector<8x96xf32>
    %146 = math.exp %145 : vector<8x96xf32>
    %cst_39 = arith.constant 1.000000e+00 : f32
    %147 = vector.broadcast %cst_39 : f32 to vector<8x96xf32>
    %148 = arith.addf %147, %146 : vector<8x96xf32>
    %149 = arith.divf %147, %148 : vector<8x96xf32>
    %150 = vector.extract_strided_slice %143 {offsets = [0, 96], sizes = [8, 32], strides = [1, 1]} : vector<8x128xf32> to vector<8x32xf32>
    %151 = math.tanh %150 : vector<8x32xf32>
    %152 = vector.extract_strided_slice %149 {offsets = [0, 0], sizes = [8, 32], strides = [1, 1]} : vector<8x96xf32> to vector<8x32xf32>
    %153 = vector.extract_strided_slice %149 {offsets = [0, 32], sizes = [8, 32], strides = [1, 1]} : vector<8x96xf32> to vector<8x32xf32>
    %154 = vector.extract_strided_slice %149 {offsets = [0, 64], sizes = [8, 32], strides = [1, 1]} : vector<8x96xf32> to vector<8x32xf32>
    %155 = arith.mulf %153, %114 : vector<8x32xf32>
    %156 = arith.mulf %152, %151 : vector<8x32xf32>
    %157 = arith.addf %155, %156 : vector<8x32xf32>
    %158 = math.tanh %157 : vector<8x32xf32>
    %159 = arith.mulf %154, %158 : vector<8x32xf32>
    %c4_i32 = arith.constant 4 : i32
    %cst_40 = arith.constant dense<0.000000e+00> : vector<8x128xf32>
    %160 = tpu.matmul %159, %9, %cst_40 {dimension_numbers = #tpu.dot_dimension_numbers<[1], [0], [0], [1], [0, 0, 1, 1], [], []>} : vector<8x32xf32>, vector<32x128xf32>, vector<8x128xf32> -> vector<8x128xf32>
    %cst_41 = arith.constant dense<0.000000e+00> : vector<8x128xf32>
    %161 = tpu.matmul %137, %8, %cst_41 {dimension_numbers = #tpu.dot_dimension_numbers<[1], [0], [0], [1], [0, 0, 1, 1], [], []>} : vector<8x32xf32>, vector<32x128xf32>, vector<8x128xf32> -> vector<8x128xf32>
    %162 = arith.addf %160, %161 : vector<8x128xf32>
    %163 = vector.broadcast %10 : vector<1x128xf32> to vector<8x128xf32>
    %164 = arith.addf %162, %163 : vector<8x128xf32>
    %165 = vector.extract_strided_slice %164 {offsets = [0, 0], sizes = [8, 96], strides = [1, 1]} : vector<8x128xf32> to vector<8x96xf32>
    %166 = arith.negf %165 : vector<8x96xf32>
    %167 = math.exp %166 : vector<8x96xf32>
    %cst_42 = arith.constant 1.000000e+00 : f32
    %168 = vector.broadcast %cst_42 : f32 to vector<8x96xf32>
    %169 = arith.addf %168, %167 : vector<8x96xf32>
    %170 = arith.divf %168, %169 : vector<8x96xf32>
    %171 = vector.extract_strided_slice %164 {offsets = [0, 96], sizes = [8, 32], strides = [1, 1]} : vector<8x128xf32> to vector<8x32xf32>
    %172 = math.tanh %171 : vector<8x32xf32>
    %173 = vector.extract_strided_slice %170 {offsets = [0, 0], sizes = [8, 32], strides = [1, 1]} : vector<8x96xf32> to vector<8x32xf32>
    %174 = vector.extract_strided_slice %170 {offsets = [0, 32], sizes = [8, 32], strides = [1, 1]} : vector<8x96xf32> to vector<8x32xf32>
    %175 = vector.extract_strided_slice %170 {offsets = [0, 64], sizes = [8, 32], strides = [1, 1]} : vector<8x96xf32> to vector<8x32xf32>
    %176 = arith.mulf %174, %135 : vector<8x32xf32>
    %177 = arith.mulf %173, %172 : vector<8x32xf32>
    %178 = arith.addf %176, %177 : vector<8x32xf32>
    %179 = math.tanh %178 : vector<8x32xf32>
    %180 = arith.mulf %175, %179 : vector<8x32xf32>
    %c8_i32_43 = arith.constant 8 : i32
    %181 = arith.muli %c4_i32, %c8_i32_43 : i32
    %182 = tpu.assume_multiple %181, 8 : i32
    %183 = arith.index_cast %182 : i32 to index
    %c0_44 = arith.constant 0 : index
    %184 = vector.load %arg10[%183, %c0_44] : memref<64x128xf32, #tpu.memory_space<vmem>>, vector<8x128xf32>
    %cst_45 = arith.constant dense<0.000000e+00> : vector<8x128xf32>
    %185 = tpu.matmul %159, %7, %cst_45 {dimension_numbers = #tpu.dot_dimension_numbers<[1], [0], [0], [1], [0, 0, 1, 1], [], []>} : vector<8x32xf32>, vector<32x128xf32>, vector<8x128xf32> -> vector<8x128xf32>
    %186 = arith.addf %184, %185 : vector<8x128xf32>
    %187 = vector.extract_strided_slice %186 {offsets = [0, 0], sizes = [8, 96], strides = [1, 1]} : vector<8x128xf32> to vector<8x96xf32>
    %188 = arith.negf %187 : vector<8x96xf32>
    %189 = math.exp %188 : vector<8x96xf32>
    %cst_46 = arith.constant 1.000000e+00 : f32
    %190 = vector.broadcast %cst_46 : f32 to vector<8x96xf32>
    %191 = arith.addf %190, %189 : vector<8x96xf32>
    %192 = arith.divf %190, %191 : vector<8x96xf32>
    %193 = vector.extract_strided_slice %186 {offsets = [0, 96], sizes = [8, 32], strides = [1, 1]} : vector<8x128xf32> to vector<8x32xf32>
    %194 = math.tanh %193 : vector<8x32xf32>
    %195 = vector.extract_strided_slice %192 {offsets = [0, 0], sizes = [8, 32], strides = [1, 1]} : vector<8x96xf32> to vector<8x32xf32>
    %196 = vector.extract_strided_slice %192 {offsets = [0, 32], sizes = [8, 32], strides = [1, 1]} : vector<8x96xf32> to vector<8x32xf32>
    %197 = vector.extract_strided_slice %192 {offsets = [0, 64], sizes = [8, 32], strides = [1, 1]} : vector<8x96xf32> to vector<8x32xf32>
    %198 = arith.mulf %196, %157 : vector<8x32xf32>
    %199 = arith.mulf %195, %194 : vector<8x32xf32>
    %200 = arith.addf %198, %199 : vector<8x32xf32>
    %201 = math.tanh %200 : vector<8x32xf32>
    %202 = arith.mulf %197, %201 : vector<8x32xf32>
    %c5_i32 = arith.constant 5 : i32
    %cst_47 = arith.constant dense<0.000000e+00> : vector<8x128xf32>
    %203 = tpu.matmul %202, %9, %cst_47 {dimension_numbers = #tpu.dot_dimension_numbers<[1], [0], [0], [1], [0, 0, 1, 1], [], []>} : vector<8x32xf32>, vector<32x128xf32>, vector<8x128xf32> -> vector<8x128xf32>
    %cst_48 = arith.constant dense<0.000000e+00> : vector<8x128xf32>
    %204 = tpu.matmul %180, %8, %cst_48 {dimension_numbers = #tpu.dot_dimension_numbers<[1], [0], [0], [1], [0, 0, 1, 1], [], []>} : vector<8x32xf32>, vector<32x128xf32>, vector<8x128xf32> -> vector<8x128xf32>
    %205 = arith.addf %203, %204 : vector<8x128xf32>
    %206 = vector.broadcast %10 : vector<1x128xf32> to vector<8x128xf32>
    %207 = arith.addf %205, %206 : vector<8x128xf32>
    %208 = vector.extract_strided_slice %207 {offsets = [0, 0], sizes = [8, 96], strides = [1, 1]} : vector<8x128xf32> to vector<8x96xf32>
    %209 = arith.negf %208 : vector<8x96xf32>
    %210 = math.exp %209 : vector<8x96xf32>
    %cst_49 = arith.constant 1.000000e+00 : f32
    %211 = vector.broadcast %cst_49 : f32 to vector<8x96xf32>
    %212 = arith.addf %211, %210 : vector<8x96xf32>
    %213 = arith.divf %211, %212 : vector<8x96xf32>
    %214 = vector.extract_strided_slice %207 {offsets = [0, 96], sizes = [8, 32], strides = [1, 1]} : vector<8x128xf32> to vector<8x32xf32>
    %215 = math.tanh %214 : vector<8x32xf32>
    %216 = vector.extract_strided_slice %213 {offsets = [0, 0], sizes = [8, 32], strides = [1, 1]} : vector<8x96xf32> to vector<8x32xf32>
    %217 = vector.extract_strided_slice %213 {offsets = [0, 32], sizes = [8, 32], strides = [1, 1]} : vector<8x96xf32> to vector<8x32xf32>
    %218 = vector.extract_strided_slice %213 {offsets = [0, 64], sizes = [8, 32], strides = [1, 1]} : vector<8x96xf32> to vector<8x32xf32>
    %219 = arith.mulf %217, %178 : vector<8x32xf32>
    %220 = arith.mulf %216, %215 : vector<8x32xf32>
    %221 = arith.addf %219, %220 : vector<8x32xf32>
    %222 = math.tanh %221 : vector<8x32xf32>
    %223 = arith.mulf %218, %222 : vector<8x32xf32>
    %c8_i32_50 = arith.constant 8 : i32
    %224 = arith.muli %c5_i32, %c8_i32_50 : i32
    %225 = tpu.assume_multiple %224, 8 : i32
    %226 = arith.index_cast %225 : i32 to index
    %c0_51 = arith.constant 0 : index
    %227 = vector.load %arg10[%226, %c0_51] : memref<64x128xf32, #tpu.memory_space<vmem>>, vector<8x128xf32>
    %cst_52 = arith.constant dense<0.000000e+00> : vector<8x128xf32>
    %228 = tpu.matmul %202, %7, %cst_52 {dimension_numbers = #tpu.dot_dimension_numbers<[1], [0], [0], [1], [0, 0, 1, 1], [], []>} : vector<8x32xf32>, vector<32x128xf32>, vector<8x128xf32> -> vector<8x128xf32>
    %229 = arith.addf %227, %228 : vector<8x128xf32>
    %230 = vector.extract_strided_slice %229 {offsets = [0, 0], sizes = [8, 96], strides = [1, 1]} : vector<8x128xf32> to vector<8x96xf32>
    %231 = arith.negf %230 : vector<8x96xf32>
    %232 = math.exp %231 : vector<8x96xf32>
    %cst_53 = arith.constant 1.000000e+00 : f32
    %233 = vector.broadcast %cst_53 : f32 to vector<8x96xf32>
    %234 = arith.addf %233, %232 : vector<8x96xf32>
    %235 = arith.divf %233, %234 : vector<8x96xf32>
    %236 = vector.extract_strided_slice %229 {offsets = [0, 96], sizes = [8, 32], strides = [1, 1]} : vector<8x128xf32> to vector<8x32xf32>
    %237 = math.tanh %236 : vector<8x32xf32>
    %238 = vector.extract_strided_slice %235 {offsets = [0, 0], sizes = [8, 32], strides = [1, 1]} : vector<8x96xf32> to vector<8x32xf32>
    %239 = vector.extract_strided_slice %235 {offsets = [0, 32], sizes = [8, 32], strides = [1, 1]} : vector<8x96xf32> to vector<8x32xf32>
    %240 = vector.extract_strided_slice %235 {offsets = [0, 64], sizes = [8, 32], strides = [1, 1]} : vector<8x96xf32> to vector<8x32xf32>
    %241 = arith.mulf %239, %200 : vector<8x32xf32>
    %242 = arith.mulf %238, %237 : vector<8x32xf32>
    %243 = arith.addf %241, %242 : vector<8x32xf32>
    %244 = math.tanh %243 : vector<8x32xf32>
    %245 = arith.mulf %240, %244 : vector<8x32xf32>
    %c6_i32 = arith.constant 6 : i32
    %cst_54 = arith.constant dense<0.000000e+00> : vector<8x128xf32>
    %246 = tpu.matmul %245, %9, %cst_54 {dimension_numbers = #tpu.dot_dimension_numbers<[1], [0], [0], [1], [0, 0, 1, 1], [], []>} : vector<8x32xf32>, vector<32x128xf32>, vector<8x128xf32> -> vector<8x128xf32>
    %cst_55 = arith.constant dense<0.000000e+00> : vector<8x128xf32>
    %247 = tpu.matmul %223, %8, %cst_55 {dimension_numbers = #tpu.dot_dimension_numbers<[1], [0], [0], [1], [0, 0, 1, 1], [], []>} : vector<8x32xf32>, vector<32x128xf32>, vector<8x128xf32> -> vector<8x128xf32>
    %248 = arith.addf %246, %247 : vector<8x128xf32>
    %249 = vector.broadcast %10 : vector<1x128xf32> to vector<8x128xf32>
    %250 = arith.addf %248, %249 : vector<8x128xf32>
    %251 = vector.extract_strided_slice %250 {offsets = [0, 0], sizes = [8, 96], strides = [1, 1]} : vector<8x128xf32> to vector<8x96xf32>
    %252 = arith.negf %251 : vector<8x96xf32>
    %253 = math.exp %252 : vector<8x96xf32>
    %cst_56 = arith.constant 1.000000e+00 : f32
    %254 = vector.broadcast %cst_56 : f32 to vector<8x96xf32>
    %255 = arith.addf %254, %253 : vector<8x96xf32>
    %256 = arith.divf %254, %255 : vector<8x96xf32>
    %257 = vector.extract_strided_slice %250 {offsets = [0, 96], sizes = [8, 32], strides = [1, 1]} : vector<8x128xf32> to vector<8x32xf32>
    %258 = math.tanh %257 : vector<8x32xf32>
    %259 = vector.extract_strided_slice %256 {offsets = [0, 0], sizes = [8, 32], strides = [1, 1]} : vector<8x96xf32> to vector<8x32xf32>
    %260 = vector.extract_strided_slice %256 {offsets = [0, 32], sizes = [8, 32], strides = [1, 1]} : vector<8x96xf32> to vector<8x32xf32>
    %261 = vector.extract_strided_slice %256 {offsets = [0, 64], sizes = [8, 32], strides = [1, 1]} : vector<8x96xf32> to vector<8x32xf32>
    %262 = arith.mulf %260, %221 : vector<8x32xf32>
    %263 = arith.mulf %259, %258 : vector<8x32xf32>
    %264 = arith.addf %262, %263 : vector<8x32xf32>
    %265 = math.tanh %264 : vector<8x32xf32>
    %266 = arith.mulf %261, %265 : vector<8x32xf32>
    %c8_i32_57 = arith.constant 8 : i32
    %267 = arith.muli %c6_i32, %c8_i32_57 : i32
    %268 = tpu.assume_multiple %267, 8 : i32
    %269 = arith.index_cast %268 : i32 to index
    %c0_58 = arith.constant 0 : index
    %270 = vector.load %arg10[%269, %c0_58] : memref<64x128xf32, #tpu.memory_space<vmem>>, vector<8x128xf32>
    %cst_59 = arith.constant dense<0.000000e+00> : vector<8x128xf32>
    %271 = tpu.matmul %245, %7, %cst_59 {dimension_numbers = #tpu.dot_dimension_numbers<[1], [0], [0], [1], [0, 0, 1, 1], [], []>} : vector<8x32xf32>, vector<32x128xf32>, vector<8x128xf32> -> vector<8x128xf32>
    %272 = arith.addf %270, %271 : vector<8x128xf32>
    %273 = vector.extract_strided_slice %272 {offsets = [0, 0], sizes = [8, 96], strides = [1, 1]} : vector<8x128xf32> to vector<8x96xf32>
    %274 = arith.negf %273 : vector<8x96xf32>
    %275 = math.exp %274 : vector<8x96xf32>
    %cst_60 = arith.constant 1.000000e+00 : f32
    %276 = vector.broadcast %cst_60 : f32 to vector<8x96xf32>
    %277 = arith.addf %276, %275 : vector<8x96xf32>
    %278 = arith.divf %276, %277 : vector<8x96xf32>
    %279 = vector.extract_strided_slice %272 {offsets = [0, 96], sizes = [8, 32], strides = [1, 1]} : vector<8x128xf32> to vector<8x32xf32>
    %280 = math.tanh %279 : vector<8x32xf32>
    %281 = vector.extract_strided_slice %278 {offsets = [0, 0], sizes = [8, 32], strides = [1, 1]} : vector<8x96xf32> to vector<8x32xf32>
    %282 = vector.extract_strided_slice %278 {offsets = [0, 32], sizes = [8, 32], strides = [1, 1]} : vector<8x96xf32> to vector<8x32xf32>
    %283 = vector.extract_strided_slice %278 {offsets = [0, 64], sizes = [8, 32], strides = [1, 1]} : vector<8x96xf32> to vector<8x32xf32>
    %284 = arith.mulf %282, %243 : vector<8x32xf32>
    %285 = arith.mulf %281, %280 : vector<8x32xf32>
    %286 = arith.addf %284, %285 : vector<8x32xf32>
    %287 = math.tanh %286 : vector<8x32xf32>
    %288 = arith.mulf %283, %287 : vector<8x32xf32>
    %c7_i32 = arith.constant 7 : i32
    %cst_61 = arith.constant dense<0.000000e+00> : vector<8x128xf32>
    %289 = tpu.matmul %288, %9, %cst_61 {dimension_numbers = #tpu.dot_dimension_numbers<[1], [0], [0], [1], [0, 0, 1, 1], [], []>} : vector<8x32xf32>, vector<32x128xf32>, vector<8x128xf32> -> vector<8x128xf32>
    %cst_62 = arith.constant dense<0.000000e+00> : vector<8x128xf32>
    %290 = tpu.matmul %266, %8, %cst_62 {dimension_numbers = #tpu.dot_dimension_numbers<[1], [0], [0], [1], [0, 0, 1, 1], [], []>} : vector<8x32xf32>, vector<32x128xf32>, vector<8x128xf32> -> vector<8x128xf32>
    %291 = arith.addf %289, %290 : vector<8x128xf32>
    %292 = vector.broadcast %10 : vector<1x128xf32> to vector<8x128xf32>
    %293 = arith.addf %291, %292 : vector<8x128xf32>
    %294 = vector.extract_strided_slice %293 {offsets = [0, 0], sizes = [8, 96], strides = [1, 1]} : vector<8x128xf32> to vector<8x96xf32>
    %295 = arith.negf %294 : vector<8x96xf32>
    %296 = math.exp %295 : vector<8x96xf32>
    %cst_63 = arith.constant 1.000000e+00 : f32
    %297 = vector.broadcast %cst_63 : f32 to vector<8x96xf32>
    %298 = arith.addf %297, %296 : vector<8x96xf32>
    %299 = arith.divf %297, %298 : vector<8x96xf32>
    %300 = vector.extract_strided_slice %293 {offsets = [0, 96], sizes = [8, 32], strides = [1, 1]} : vector<8x128xf32> to vector<8x32xf32>
    %301 = math.tanh %300 : vector<8x32xf32>
    %302 = vector.extract_strided_slice %299 {offsets = [0, 0], sizes = [8, 32], strides = [1, 1]} : vector<8x96xf32> to vector<8x32xf32>
    %303 = vector.extract_strided_slice %299 {offsets = [0, 32], sizes = [8, 32], strides = [1, 1]} : vector<8x96xf32> to vector<8x32xf32>
    %304 = vector.extract_strided_slice %299 {offsets = [0, 64], sizes = [8, 32], strides = [1, 1]} : vector<8x96xf32> to vector<8x32xf32>
    %305 = arith.mulf %303, %264 : vector<8x32xf32>
    %306 = arith.mulf %302, %301 : vector<8x32xf32>
    %307 = arith.addf %305, %306 : vector<8x32xf32>
    %308 = math.tanh %307 : vector<8x32xf32>
    %309 = arith.mulf %304, %308 : vector<8x32xf32>
    %c8_i32_64 = arith.constant 8 : i32
    %310 = arith.muli %c7_i32, %c8_i32_64 : i32
    %311 = tpu.assume_multiple %310, 8 : i32
    %312 = arith.index_cast %311 : i32 to index
    %c0_65 = arith.constant 0 : index
    %313 = vector.load %arg10[%312, %c0_65] : memref<64x128xf32, #tpu.memory_space<vmem>>, vector<8x128xf32>
    %cst_66 = arith.constant dense<0.000000e+00> : vector<8x128xf32>
    %314 = tpu.matmul %288, %7, %cst_66 {dimension_numbers = #tpu.dot_dimension_numbers<[1], [0], [0], [1], [0, 0, 1, 1], [], []>} : vector<8x32xf32>, vector<32x128xf32>, vector<8x128xf32> -> vector<8x128xf32>
    %315 = arith.addf %313, %314 : vector<8x128xf32>
    %316 = vector.extract_strided_slice %315 {offsets = [0, 0], sizes = [8, 96], strides = [1, 1]} : vector<8x128xf32> to vector<8x96xf32>
    %317 = arith.negf %316 : vector<8x96xf32>
    %318 = math.exp %317 : vector<8x96xf32>
    %cst_67 = arith.constant 1.000000e+00 : f32
    %319 = vector.broadcast %cst_67 : f32 to vector<8x96xf32>
    %320 = arith.addf %319, %318 : vector<8x96xf32>
    %321 = arith.divf %319, %320 : vector<8x96xf32>
    %322 = vector.extract_strided_slice %315 {offsets = [0, 96], sizes = [8, 32], strides = [1, 1]} : vector<8x128xf32> to vector<8x32xf32>
    %323 = math.tanh %322 : vector<8x32xf32>
    %324 = vector.extract_strided_slice %321 {offsets = [0, 0], sizes = [8, 32], strides = [1, 1]} : vector<8x96xf32> to vector<8x32xf32>
    %325 = vector.extract_strided_slice %321 {offsets = [0, 32], sizes = [8, 32], strides = [1, 1]} : vector<8x96xf32> to vector<8x32xf32>
    %326 = vector.extract_strided_slice %321 {offsets = [0, 64], sizes = [8, 32], strides = [1, 1]} : vector<8x96xf32> to vector<8x32xf32>
    %327 = arith.mulf %325, %286 : vector<8x32xf32>
    %328 = arith.mulf %324, %323 : vector<8x32xf32>
    %329 = arith.addf %327, %328 : vector<8x32xf32>
    %330 = math.tanh %329 : vector<8x32xf32>
    %331 = arith.mulf %326, %330 : vector<8x32xf32>
    %c7_i32_68 = arith.constant 7 : i32
    %cst_69 = arith.constant dense<0.000000e+00> : vector<8x128xf32>
    %332 = tpu.matmul %331, %9, %cst_69 {dimension_numbers = #tpu.dot_dimension_numbers<[1], [0], [0], [1], [0, 0, 1, 1], [], []>} : vector<8x32xf32>, vector<32x128xf32>, vector<8x128xf32> -> vector<8x128xf32>
    %cst_70 = arith.constant dense<0.000000e+00> : vector<8x128xf32>
    %333 = tpu.matmul %309, %8, %cst_70 {dimension_numbers = #tpu.dot_dimension_numbers<[1], [0], [0], [1], [0, 0, 1, 1], [], []>} : vector<8x32xf32>, vector<32x128xf32>, vector<8x128xf32> -> vector<8x128xf32>
    %334 = arith.addf %332, %333 : vector<8x128xf32>
    %335 = vector.broadcast %10 : vector<1x128xf32> to vector<8x128xf32>
    %336 = arith.addf %334, %335 : vector<8x128xf32>
    %337 = vector.extract_strided_slice %336 {offsets = [0, 0], sizes = [8, 96], strides = [1, 1]} : vector<8x128xf32> to vector<8x96xf32>
    %338 = arith.negf %337 : vector<8x96xf32>
    %339 = math.exp %338 : vector<8x96xf32>
    %cst_71 = arith.constant 1.000000e+00 : f32
    %340 = vector.broadcast %cst_71 : f32 to vector<8x96xf32>
    %341 = arith.addf %340, %339 : vector<8x96xf32>
    %342 = arith.divf %340, %341 : vector<8x96xf32>
    %343 = vector.extract_strided_slice %336 {offsets = [0, 96], sizes = [8, 32], strides = [1, 1]} : vector<8x128xf32> to vector<8x32xf32>
    %344 = math.tanh %343 : vector<8x32xf32>
    %345 = vector.extract_strided_slice %342 {offsets = [0, 0], sizes = [8, 32], strides = [1, 1]} : vector<8x96xf32> to vector<8x32xf32>
    %346 = vector.extract_strided_slice %342 {offsets = [0, 32], sizes = [8, 32], strides = [1, 1]} : vector<8x96xf32> to vector<8x32xf32>
    %347 = vector.extract_strided_slice %342 {offsets = [0, 64], sizes = [8, 32], strides = [1, 1]} : vector<8x96xf32> to vector<8x32xf32>
    %348 = arith.mulf %346, %307 : vector<8x32xf32>
    %349 = arith.mulf %345, %344 : vector<8x32xf32>
    %350 = arith.addf %348, %349 : vector<8x32xf32>
    %351 = math.tanh %350 : vector<8x32xf32>
    %352 = arith.mulf %347, %351 : vector<8x32xf32>
    %c0_72 = arith.constant 0 : index
    %c0_73 = arith.constant 0 : index
    %353 = vector.load %arg7[%c0_72, %c0_73] : memref<32x4xf32, #tpu.memory_space<vmem>>, vector<32x4xf32>
    %cst_74 = arith.constant dense<0.000000e+00> : vector<8x4xf32>
    %354 = tpu.matmul %352, %353, %cst_74 {dimension_numbers = #tpu.dot_dimension_numbers<[1], [0], [0], [1], [0, 0, 1, 1], [], []>} : vector<8x32xf32>, vector<32x4xf32>, vector<8x4xf32> -> vector<8x4xf32>
    %c0_75 = arith.constant 0 : index
    %c0_76 = arith.constant 0 : index
    %355 = vector.load %arg8[%c0_75, %c0_76] : memref<1x4xf32, #tpu.memory_space<vmem>>, vector<1x4xf32>
    %356 = vector.broadcast %355 : vector<1x4xf32> to vector<8x4xf32>
    %357 = arith.addf %354, %356 : vector<8x4xf32>
    %c0_77 = arith.constant 0 : index
    %c0_78 = arith.constant 0 : index
    %358 = vector.load %arg9[%c0_77, %c0_78] : memref<8x4xf32, #tpu.memory_space<vmem>>, vector<8x4xf32>
    tpu.vector_store %arg9[%c0_77, %c0_78], %357 {strides = array<i32>} : memref<8x4xf32, #tpu.memory_space<vmem>>, vector<8x4xf32>,
    return
  }
}

</mosaic_0001>

<bundles_post_ra>
// kernel: tpu_custom_call.1
= control target key start
LH: loop header
LB: loop body
LE: loop exit
PB: predicated region body
PF: predicated region fallthrough
CT: control target
= control target key end

     0   :  { %vm49_vm0 = vcmask 130048   ;;  %v3236_v0 = vmov 0.0|0.0   ;;  %vm3237_vm1 = vmmov 0   ;;  %v3238_v4 = vmov 0.0   ;;  %s3239_s25 = smov 32   ;;  %s3733_s1 = inlined_call_operand.vmem [shape: f32[16,128], index: 1, kind: input, shape index: {}]   ;;  %s3734_s2 = inlined_call_operand.vmem [shape: f32[32,128], index: 2, kind: input, shape index: {}]   ;;  %s3735_s0 = inlined_call_operand.vmem [shape: f32[64,16], index: 0, kind: input, shape index: {}]   ;;  %s3736_s3 = inlined_call_operand.vmem [shape: f32[1,128], index: 3, kind: input, shape index: {}]   ;;  %s3737_s4 = inlined_call_operand.vmem [shape: f32[32,128], index: 4, kind: input, shape index: {}]   ;;  %s3738_s5 = inlined_call_operand.vmem [shape: f32[32,128], index: 5, kind: input, shape index: {}]   ;;  %s3739_s6 = inlined_call_operand.vmem [shape: f32[1,128], index: 6, kind: input, shape index: {}]   ;;  %s3740_s7 = inlined_call_operand.vmem [shape: f32[32,4], index: 7, kind: input, shape index: {}]   ;;  %s3741_s8 = inlined_call_operand.vmem [shape: f32[1,4], index: 8, kind: input, shape index: {}]   ;;  %s3742_s9 = inlined_call_operand.vmem [shape: f32[8,4], index: 9, kind: output, shape index: {}]  }
   0x1   :  { %2952 = vmatprep.subr.bf16.mxu1 %v3236_v0  ;;  %v40_v1 = vld [vmem:[%s3733_s1] sm:$0xff]  ;;  %v41_v2 = vld [vmem:[%s3733_s1 + $0x8] sm:$0xff]  ;;  %2681 = vmatprep.mubr.msk.f32.mxu1 %vm3237_vm1, %v3238_v4  ;;  %v189_v9 = vld [vmem:[%s3734_s2 + $0x10] sm:$0xff]  ;;  %vm201_vm2 = vcmask 261120   ;;  %vm2466_vm3 = vcmask 31744  }
   0x2   :  { %v187_v3 = vld [vmem:[%s3734_s2] sm:$0xff]  ;;  %v2948_v5 = vpack.c.bf16 %v41_v2, %v40_v1  ;;  %v188_v6 = vld [vmem:[%s3734_s2 + $0x8] sm:$0xff]  ;;  %v190_v10 = vld [vmem:[%s3734_s2 + $0x18] sm:$0xff] }
   0x3   :  { %v32_v7 = vld [vmem:[%s3735_s0] sm:$0xff]  ;;  %v3309_v8 = vpack.c.bf16 %v188_v6, %v187_v3  ;;  %v33_v11 = vld [vmem:[%s3735_s0 + $0x8] sm:$0xff]  ;;  %v3322_v12 = vpack.c.bf16 %v190_v10, %v189_v9  ;;  %v34_v30 = vld [vmem:[%s3735_s0 + $0x10] sm:$0xff] }
   0x4   :  { %2661 = vmatprep.mubr.msk.f32.mxu0 %vm49_vm0, %v32_v7  ;;  %2949 = vmatprep.subr.bf16.mxu0 %v2948_v5  ;;  %v3335_v13 = vld [vmem:[%s3736_s3] ss:$0 sm:$0xff]  ;;  %v35_v31 = vld [vmem:[%s3735_s0 + $0x18] sm:$0xff]  ;;  %v196_v34 = vld [vmem:[%s3737_s4 + $0x8] sm:$0xff] }
   0x5   :  { %2954 = vmatpush3.bf16.msra.mxu1 %v3309_v8  ;;  %2951 = vmatpush3.bf16.msra.mxu0 %v2948_v5  ;;  %v36_v32 = vld [vmem:[%s3735_s0 + $0x20] sm:$0xff]  ;;  %v192_v37 = vld [vmem:[%s3738_s5 + $0x8] sm:$0xff]  ;;  %v193_v38 = vld [vmem:[%s3738_s5 + $0x10] sm:$0xff] }
   0x6   :  { %2955 = vmatprep.subr.bf16.mxu1 %v3236_v0  ;;  %2964 = vmatprep.subr.bf16.mxu0 %v3236_v0  ;;  %v195_v33 = vld [vmem:[%s3737_s4] sm:$0xff]  ;;  %v194_v39 = vld [vmem:[%s3738_s5 + $0x18] sm:$0xff]  ;;  %v37_v41 = vld [vmem:[%s3735_s0 + $0x28] sm:$0xff] }
   0x7   :  { %v191_v35 = vld [vmem:[%s3738_s5] sm:$0xff]  ;;  %v3364_v36 = vpack.c.bf16 %v196_v34, %v195_v33  ;;  %v197_v42 = vld [vmem:[%s3737_s4 + $0x10] sm:$0xff]  ;;  %v198_v43 = vld [vmem:[%s3737_s4 + $0x18] sm:$0xff]  ;;  %v3395_v46 = vpack.c.bf16 %v194_v39, %v193_v38 }
   0x8   :  { %2662 = vmatmul.mubr.msk.f32.vlgmr.msra.gmra.mrb[0].mxu0 %vm49_vm0, %v33_v11  ;;  %v3376_v40 = vpack.c.bf16 %v192_v37, %v191_v35  ;;  %v3389_v44 = vpack.c.bf16 %v198_v43, %v197_v42  ;;  %v38_v45 = vld [vmem:[%s3735_s0 + $0x30] sm:$0xff]  ;;  %v39_v47 = vld [vmem:[%s3735_s0 + $0x38] sm:$0xff]  ;;  %s3240_s0 = smov 64   ;;  %v3451_v61 = vld [vmem:[%s3739_s6] ss:$0 sm:$0xff] }
   0x9   :  { %2957 = vmatpush3.bf16.msra.mxu1 %v3322_v12  ;;  %2664 = vmatprep.mubr.msk.f32.mxu0 %vm49_vm0, %v34_v30 }
   0xa   :  { %2958 = vmatprep.subr.bf16.mxu1 %v3236_v0  ;;  %2966 = vmatpush3.bf16.msra.mxu0 %v3364_v36 }
   0xb   :  { %2967 = vmatprep.subr.bf16.mxu0 %v3236_v0 }
   0xc   :  { %2682 = vmatmul.mubr.f32.vlgmr.msra.gmra.mrb[0].mxu1 %v3238_v4  ;;  %2665 = vmatmul.mubr.msk.f32.gmra.mrb[2].mxu0 %vm49_vm0, %v35_v31 }
   0xd   :  { %2692 = vmatprep.mubr.msk.f32.mxu1 %vm3237_vm1, %v3238_v4  ;;  %2667 = vmatprep.mubr.msk.f32.mxu0 %vm49_vm0, %v36_v32 }
   0xe   :  { %2960 = vmatpush3.bf16.msra.mxu1 %v3376_v40  ;;  %2969 = vmatpush3.bf16.msra.mxu0 %v3389_v44 }
   0xf   :  { %2961 = vmatprep.subr.bf16.mxu1 %v3236_v0  ;;  %2976 = vmatprep.subr.bf16.mxu0 %v3236_v0 }
  0x10   :  { %2668 = vmatmul.mubr.msk.f32.gmra.mrb[4].mxu0 %vm49_vm0, %v37_v41 }
  0x11   :  { %2670 = vmatprep.mubr.msk.f32.mxu0 %vm49_vm0, %v38_v45 }
  0x12   :  { %2963 = vmatpush3.bf16.msra.mxu1 %v3395_v46 }
  0x13   :  { %2970 = vmatprep.subr.bf16.mxu1 %v3236_v0 }
  0x14   :  { %2671 = vmatmul.mubr.msk.f32.gmra.mrb[6].mxu0 %vm49_vm0, %v39_v47 }
  0x15   :  { %2703 = vmatprep.mubr.msk.f32.mxu0 %vm3237_vm1, %v3238_v4  ;;  %2693 = vmatmul.mubr.f32.vlgmr.msra.gmra.mrb[2].mxu1 %v3238_v4 }
  0x16   :  { %2972 = vmatpush3.bf16.msra.mxu1 %v3309_v8  ;;  %2714 = vmatprep.mubr.msk.f32.mxu1 %vm3237_vm1, %v3238_v4 }
  0x17   :  { %2973 = vmatprep.subr.bf16.mxu1 %v3236_v0 }
  0x1a   :  { %2975 = vmatpush3.bf16.msra.mxu1 %v3322_v12 }
  0x1b   :  { %2982 = vmatprep.subr.bf16.mxu1 %v3236_v0 }
  0xdb   :  { %v3337_v14 = vpop.f32.mrb[0].mxu0 }
  0xdc   :  { %v140_v15 = vpop.f32.mrb[1].mxu0  ;;  %v146_v60 = vadd.f32 %v3337_v14, %v3335_v13 }
  0xdd   :  { %v141_v16 = vadd.f32 %v3335_v13, %v140_v15 }
  0xdf   :  { %v271_v17 = vpop.f32.mrb[0].mxu1  ;;  %v3420_v51 = vpop.f32.mrb[2].mxu0 }
  0xe0   :  { %v275_v18 = vadd.f32 %v271_v17, %v141_v16  ;;  %v2683_v19 = vpop.f32.mrb[1].mxu1  ;;  %v3422_v52 = vpop.f32.mrb[3].mxu0 }
  0xe2   :  { %3107 = vtanh.f32 %v275_v18  ;;  %v2481_v21 = vmul.f32 -1.442695, %v275_v18 }
  0xe3   :  { %v3424_v53 = vpop.f32.mrb[4].mxu0 }
  0xe4   :  { %3109 = vpow2.f32 %v2481_v21  ;;  %v3426_v54 = vpop.f32.mrb[5].mxu0 }
  0xe7   :  { %v3428_v55 = vpop.f32.mrb[6].mxu0 }
  0xe8   :  { %v3430_v56 = vpop.f32.mrb[7].mxu0  ;;  %v366_v57 = vpop.f32.mrb[2].mxu1 }
  0xe9   :  { %v2694_v58 = vpop.f32.mrb[3].mxu1 }
  0xec   :  { %v3108_v20 = vpop.eup %3107 }
  0xed   :  { %285 = vrot.lane.b32.xlu0 %v3108_v20, %s3239_s25 }
  0xee   :  { %v3110_v22 = vpop.eup %3109 }
  0xef   :  { %v279_v23 = vadd.f32 1.0, %v3110_v22 }
  0xf1   :  { %3111 = vrcp.f32 %v279_v23 }
  0xfb   :  { %v3112_v24 = vpop.eup %3111 }
  0xfc   :  { %v283_v27 = vmul.f32 0.0, %v3112_v24 }
 0x15f   :  { %v286_v25 = vpop.permute.xlu0 %285 }
 0x160   :  { %v288_v26 = vmul.f32 %v3112_v24, %v286_v25 }
 0x162   :  { %290 = vrot.lane.b32.xlu0 %v288_v26, %s3239_s25 }
 0x1d4   :  { %v291_v28 = vpop.permute.xlu0 %290 }
 0x1d5   :  { %v3342_v29 = vadd.f32 %v291_v28, %v283_v27 }
 0x1d7   :  { %3113 = vtanh.f32 %v3342_v29 }
 0x1e1   :  { %v3114_v48 = vpop.eup %3113 }
 0x1e2   :  { %296 = vrot.lane.b32.xlu1 %v3114_v48, %s3239_s25  ;;  %v151_v48 = vadd.f32 %v3335_v13, %v3422_v52 }
 0x254   :  { %v297_v49 = vpop.permute.xlu1 %296 }
 0x255   :  { %v299_v50 = vmul.f32 %v3112_v24, %v297_v49 }
 0x257   :  { %371 = vrot.lane.b32.xlu1 %v299_v50, %s3240_s0 }
 0x2c9   :  { %v372_v59 = vpop.permute.xlu1 %371 }
 0x2ca   :  { %2704 = vmatmul.mubr.msk.f32.vlgmr.msra.gmra.mrb[8].mxu0 %vm201_vm2, %v372_v59  ;;  %2715 = vmatmul.mubr.msk.f32.vlgmr.msra.gmra.mrb[4].mxu1 %vm201_vm2, %v372_v59 }
 0x2cb   :  { %2984 = vmatpush3.bf16.msra.mxu1 %v3364_v36  ;;  %2978 = vmatpush3.bf16.msra.mxu0 %v3376_v40 }
 0x2cc   :  { %2985 = vmatprep.subr.bf16.mxu1 %v3236_v0  ;;  %2979 = vmatprep.subr.bf16.mxu0 %v3236_v0 }
 0x2cd   :  { %2736 = vmatprep.mubr.msk.f32.mxu1 %vm3237_vm1, %v3238_v4  ;;  %2725 = vmatprep.mubr.msk.f32.mxu0 %vm3237_vm1, %v3238_v4 }
 0x2cf   :  { %2987 = vmatpush3.bf16.msra.mxu1 %v3389_v44  ;;  %2981 = vmatpush3.bf16.msra.mxu0 %v3395_v46 }
 0x2d0   :  { %2988 = vmatprep.subr.bf16.mxu0 %v3236_v0  ;;  %2994 = vmatprep.subr.bf16.mxu1 %v3236_v0 }
 0x39d   :  { %v441_v62 = vpop.f32.mrb[8].mxu0  ;;  %v544_v63 = vpop.f32.mrb[4].mxu1 }
 0x39e   :  { %v442_v1 = vadd.f32 %v441_v62, %v366_v57  ;;  %v548_v2 = vadd.f32 %v544_v63, %v146_v60  ;;  %v2705_v3 = vpop.f32.mrb[9].mxu0  ;;  %v2716_v5 = vpop.f32.mrb[5].mxu1 }
 0x3a0   :  { %v451_v6 = vadd.f32 %v3451_v61, %v442_v1  ;;  %3115 = vtanh.f32 %v548_v2  ;;  %v2486_v10 = vmul.f32 -1.442695, %v548_v2 }
 0x3a2   :  { %3117 = vtanh.f32 %v451_v6  ;;  %v2484_v11 = vmul.f32 -1.442695, %v451_v6 }
 0x3a3   :  { %3119 = vpow2.f32 %v2486_v10 }
 0x3a4   :  { %3121 = vpow2.f32 %v2484_v11 }
 0x3aa   :  { %v3116_v7 = vpop.eup %3115 }
 0x3ab   :  { %558 = vrot.lane.b32.xlu1 %v3116_v7, %s3239_s25 }
 0x3ac   :  { %v3118_v9 = vpop.eup %3117 }
 0x3ad   :  { %461 = vrot.lane.b32.xlu0 %v3118_v9, %s3239_s25  ;;  %v3120_v14 = vpop.eup %3119 }
 0x3ae   :  { %v3122_v15 = vpop.eup %3121  ;;  %v552_v16 = vadd.f32 1.0, %v3120_v14 }
 0x3af   :  { %v455_v17 = vadd.f32 1.0, %v3122_v15 }
 0x3b0   :  { %3123 = vrcp.f32 %v552_v16 }
 0x3b1   :  { %3125 = vrcp.f32 %v455_v17 }
 0x3ba   :  { %v3124_v18 = vpop.eup %3123 }
 0x3bb   :  { %v3126_v21 = vpop.eup %3125  ;;  %v556_v24 = vmul.f32 %v3124_v18, %v3342_v29 }
 0x3bc   :  { %v459_v27 = vmul.f32 0.0, %v3126_v21 }
 0x41d   :  { %v559_v19 = vpop.permute.xlu1 %558 }
 0x41e   :  { %v561_v20 = vmul.f32 %v3124_v18, %v559_v19 }
 0x41f   :  { %v462_v22 = vpop.permute.xlu0 %461 }
 0x420   :  { %v464_v23 = vmul.f32 %v3126_v21, %v462_v22  ;;  %563 = vrot.lane.b32.xlu1 %v561_v20, %s3239_s25 }
 0x422   :  { %466 = vrot.lane.b32.xlu0 %v464_v23, %s3239_s25 }
 0x492   :  { %v564_v25 = vpop.permute.xlu1 %563 }
 0x493   :  { %v3459_v26 = vadd.f32 %v564_v25, %v556_v24 }
 0x494   :  { %v467_v28 = vpop.permute.xlu0 %466 }
 0x495   :  { %3127 = vtanh.f32 %v3459_v26  ;;  %v3462_v30 = vadd.f32 %v467_v28, %v459_v27 }
 0x497   :  { %3129 = vtanh.f32 %v3462_v30 }
 0x49f   :  { %v3128_v31 = vpop.eup %3127 }
 0x4a0   :  { %569 = vrot.lane.b32.xlu1 %v3128_v31, %s3239_s25  ;;  %v156_v31 = vadd.f32 %v3420_v51, %v3335_v13 }
 0x4a1   :  { %v3130_v32 = vpop.eup %3129 }
 0x4a2   :  { %472 = vrot.lane.b32.xlu0 %v3130_v32, %s3239_s25 }
 0x512   :  { %v570_v33 = vpop.permute.xlu1 %569 }
 0x513   :  { %v572_v34 = vmul.f32 %v3124_v18, %v570_v33 }
 0x514   :  { %v473_v29 = vpop.permute.xlu0 %472 }
 0x515   :  { %v475_v35 = vmul.f32 %v3126_v21, %v473_v29  ;;  %649 = vrot.lane.b32.xlu1 %v572_v34, %s3240_s0 }
 0x517   :  { %574 = vrot.lane.b32.xlu0 %v475_v35, %s3240_s0 }
 0x587   :  { %v650_v37 = vpop.permute.xlu1 %649 }
 0x588   :  { %2737 = vmatmul.mubr.msk.f32.vlgmr.msra.gmra.mrb[6].mxu1 %vm201_vm2, %v650_v37 }
 0x589   :  { %v575_v38 = vpop.permute.xlu0 %574  ;;  %2996 = vmatpush3.bf16.msra.mxu1 %v3376_v40  ;;  %2758 = vmatprep.mubr.msk.f32.mxu1 %vm3237_vm1, %v3238_v4 }
 0x58a   :  { %2726 = vmatmul.mubr.msk.f32.vlgmr.msra.gmra.mrb[10].mxu0 %vm201_vm2, %v575_v38  ;;  %2997 = vmatprep.subr.bf16.mxu1 %v3236_v0 }
 0x58b   :  { %2990 = vmatpush3.bf16.msra.mxu0 %v3309_v8  ;;  %2747 = vmatprep.mubr.msk.f32.mxu0 %vm3237_vm1, %v3238_v4 }
 0x58c   :  { %2991 = vmatprep.subr.bf16.mxu0 %v3236_v0 }
 0x58d   :  { %2999 = vmatpush3.bf16.msra.mxu1 %v3395_v46 }
 0x58e   :  { %3006 = vmatprep.subr.bf16.mxu1 %v3236_v0 }
 0x58f   :  { %2993 = vmatpush3.bf16.msra.mxu0 %v3322_v12 }
 0x590   :  { %3000 = vmatprep.subr.bf16.mxu0 %v3236_v0 }
 0x592   :  { %2748 = vmatmul.mubr.msk.f32.vlgmr.msra.gmra.mrb[12].mxu0 %vm201_vm2, %v650_v37 }
 0x593   :  { %3002 = vmatpush3.bf16.msra.mxu0 %v3364_v36  ;;  %2769 = vmatprep.mubr.msk.f32.mxu0 %vm3237_vm1, %v3238_v4 }
 0x594   :  { %3003 = vmatprep.subr.bf16.mxu0 %v3236_v0 }
 0x597   :  { %3005 = vmatpush3.bf16.msra.mxu0 %v3389_v44 }
 0x598   :  { %3012 = vmatprep.subr.bf16.mxu0 %v3236_v0 }
 0x65b   :  { %v719_v39 = vpop.f32.mrb[6].mxu1 }
 0x65c   :  { %v2738_v41 = vpop.f32.mrb[7].mxu1 }
 0x65d   :  { %v644_v42 = vpop.f32.mrb[10].mxu0 }
 0x65e   :  { %v720_v43 = vadd.f32 %v719_v39, %v644_v42  ;;  %v2727_v45 = vpop.f32.mrb[11].mxu0 }
 0x660   :  { %v723_v47 = vadd.f32 %v3451_v61, %v720_v43 }
 0x662   :  { %3131 = vtanh.f32 %v723_v47  ;;  %v2489_v60 = vmul.f32 -1.442695, %v723_v47 }
 0x665   :  { %v816_v49 = vpop.f32.mrb[12].mxu0 }
 0x666   :  { %v820_v50 = vadd.f32 %v816_v49, %v151_v48  ;;  %v2749_v57 = vpop.f32.mrb[13].mxu0 }
 0x668   :  { %3133 = vtanh.f32 %v820_v50  ;;  %v2491_v62 = vmul.f32 -1.442695, %v820_v50 }
 0x669   :  { %3135 = vpow2.f32 %v2489_v60 }
 0x66a   :  { %3137 = vpow2.f32 %v2491_v62 }
 0x66c   :  { %v3132_v58 = vpop.eup %3131 }
 0x66d   :  { %733 = vrot.lane.b32.xlu0 %v3132_v58, %s3239_s25 }
 0x672   :  { %v3134_v59 = vpop.eup %3133 }
 0x673   :  { %830 = vrot.lane.b32.xlu1 %v3134_v59, %s3239_s25  ;;  %v3136_v63 = vpop.eup %3135 }
 0x674   :  { %v727_v1 = vadd.f32 1.0, %v3136_v63  ;;  %v3138_v2 = vpop.eup %3137 }
 0x675   :  { %v824_v3 = vadd.f32 1.0, %v3138_v2 }
 0x676   :  { %3139 = vrcp.f32 %v727_v1 }
 0x677   :  { %3141 = vrcp.f32 %v824_v3 }
 0x680   :  { %v3140_v52 = vpop.eup %3139 }
 0x681   :  { %v3142_v7 = vpop.eup %3141  ;;  %v731_v11 = vmul.f32 %v3140_v52, %v3462_v30 }
 0x682   :  { %v828_v16 = vmul.f32 %v3142_v7, %v3459_v26 }
 0x6df   :  { %v734_v5 = vpop.permute.xlu0 %733 }
 0x6e0   :  { %v736_v6 = vmul.f32 %v3140_v52, %v734_v5 }
 0x6e2   :  { %738 = vrot.lane.b32.xlu0 %v736_v6, %s3239_s25 }
 0x6e5   :  { %v831_v9 = vpop.permute.xlu1 %830 }
 0x6e6   :  { %v833_v10 = vmul.f32 %v3142_v7, %v831_v9 }
 0x6e8   :  { %835 = vrot.lane.b32.xlu1 %v833_v10, %s3239_s25 }
 0x754   :  { %v739_v14 = vpop.permute.xlu0 %738 }
 0x755   :  { %v3498_v15 = vadd.f32 %v739_v14, %v731_v11 }
 0x757   :  { %3143 = vtanh.f32 %v3498_v15 }
 0x75a   :  { %v836_v17 = vpop.permute.xlu1 %835 }
 0x75b   :  { %v3502_v18 = vadd.f32 %v836_v17, %v828_v16 }
 0x75d   :  { %3145 = vtanh.f32 %v3502_v18 }
 0x761   :  { %v3144_v19 = vpop.eup %3143 }
 0x762   :  { %744 = vrot.lane.b32.xlu0 %v3144_v19, %s3239_s25 }
 0x767   :  { %v3146_v20 = vpop.eup %3145 }
 0x768   :  { %841 = vrot.lane.b32.xlu1 %v3146_v20, %s3239_s25 }
 0x7d4   :  { %v745_v21 = vpop.permute.xlu0 %744 }
 0x7d5   :  { %v747_v22 = vmul.f32 %v3140_v52, %v745_v21  ;;  %v161_v21 = vadd.f32 %v3335_v13, %v3426_v54 }
 0x7d7   :  { %846 = vrot.lane.b32.xlu0 %v747_v22, %s3240_s0 }
 0x7da   :  { %v842_v23 = vpop.permute.xlu1 %841 }
 0x7db   :  { %v844_v24 = vmul.f32 %v3142_v7, %v842_v23 }
 0x7dd   :  { %921 = vrot.lane.b32.xlu1 %v844_v24, %s3240_s0 }
 0x849   :  { %v847_v25 = vpop.permute.xlu0 %846 }
 0x84a   :  { %2759 = vmatmul.mubr.msk.f32.vlgmr.msra.gmra.mrb[8].mxu1 %vm201_vm2, %v847_v25 }
 0x84b   :  { %3008 = vmatpush3.bf16.msra.mxu1 %v3309_v8  ;;  %2780 = vmatprep.mubr.msk.f32.mxu1 %vm3237_vm1, %v3238_v4 }
 0x84c   :  { %3009 = vmatprep.subr.bf16.mxu1 %v3236_v0 }
 0x84f   :  { %3011 = vmatpush3.bf16.msra.mxu1 %v3322_v12  ;;  %v922_v26 = vpop.permute.xlu1 %921 }
 0x850   :  { %2770 = vmatmul.mubr.msk.f32.vlgmr.msra.gmra.mrb[14].mxu0 %vm201_vm2, %v922_v26  ;;  %3018 = vmatprep.subr.bf16.mxu1 %v3236_v0 }
 0x851   :  { %3014 = vmatpush3.bf16.msra.mxu0 %v3376_v40  ;;  %2791 = vmatprep.mubr.msk.f32.mxu0 %vm3237_vm1, %v3238_v4 }
 0x852   :  { %2781 = vmatmul.mubr.msk.f32.vlgmr.msra.gmra.mrb[10].mxu1 %vm201_vm2, %v922_v26  ;;  %3015 = vmatprep.subr.bf16.mxu0 %v3236_v0 }
 0x853   :  { %3020 = vmatpush3.bf16.msra.mxu1 %v3364_v36  ;;  %2802 = vmatprep.mubr.msk.f32.mxu1 %vm3237_vm1, %v3238_v4 }
 0x854   :  { %3021 = vmatprep.subr.bf16.mxu1 %v3236_v0 }
 0x855   :  { %3017 = vmatpush3.bf16.msra.mxu0 %v3395_v46 }
 0x856   :  { %3024 = vmatprep.subr.bf16.mxu0 %v3236_v0 }
 0x857   :  { %3023 = vmatpush3.bf16.msra.mxu1 %v3389_v44 }
 0x858   :  { %3030 = vmatprep.subr.bf16.mxu1 %v3236_v0 }
 0x91d   :  { %v916_v27 = vpop.f32.mrb[8].mxu1 }
 0x91e   :  { %v2760_v28 = vpop.f32.mrb[9].mxu1 }
 0x923   :  { %v991_v30 = vpop.f32.mrb[14].mxu0 }
 0x924   :  { %v992_v32 = vadd.f32 %v991_v30, %v916_v27  ;;  %v2771_v33 = vpop.f32.mrb[15].mxu0 }
 0x925   :  { %v1088_v34 = vpop.f32.mrb[10].mxu1 }
 0x926   :  { %v995_v29 = vadd.f32 %v3451_v61, %v992_v32  ;;  %v1092_v35 = vadd.f32 %v1088_v34, %v156_v31  ;;  %v2782_v37 = vpop.f32.mrb[11].mxu1 }
 0x928   :  { %3147 = vtanh.f32 %v995_v29  ;;  %v2494_v41 = vmul.f32 -1.442695, %v995_v29  ;;  %v2496_v42 = vmul.f32 -1.442695, %v1092_v35 }
 0x929   :  { %3149 = vtanh.f32 %v1092_v35 }
 0x92a   :  { %3151 = vpow2.f32 %v2494_v41 }
 0x92b   :  { %3153 = vpow2.f32 %v2496_v42 }
 0x932   :  { %v3148_v38 = vpop.eup %3147 }
 0x933   :  { %v3150_v39 = vpop.eup %3149  ;;  %1005 = vrot.lane.b32.xlu0 %v3148_v38, %s3239_s25 }
 0x934   :  { %1102 = vrot.lane.b32.xlu1 %v3150_v39, %s3239_s25  ;;  %v3152_v51 = vpop.eup %3151 }
 0x935   :  { %v3154_v43 = vpop.eup %3153  ;;  %v999_v45 = vadd.f32 1.0, %v3152_v51 }
 0x936   :  { %v1096_v47 = vadd.f32 1.0, %v3154_v43 }
 0x937   :  { %3155 = vrcp.f32 %v999_v45 }
 0x938   :  { %3157 = vrcp.f32 %v1096_v47 }
 0x941   :  { %v3156_v48 = vpop.eup %3155 }
 0x942   :  { %v3158_v50 = vpop.eup %3157  ;;  %v1003_v60 = vmul.f32 %v3156_v48, %v3498_v15 }
 0x943   :  { %v1100_v62 = vmul.f32 %v3158_v50, %v3502_v18 }
 0x9a5   :  { %v1006_v49 = vpop.permute.xlu0 %1005 }
 0x9a6   :  { %v1103_v57 = vpop.permute.xlu1 %1102  ;;  %v1008_v58 = vmul.f32 %v3156_v48, %v1006_v49 }
 0x9a7   :  { %v1105_v59 = vmul.f32 %v3158_v50, %v1103_v57 }
 0x9a8   :  { %1010 = vrot.lane.b32.xlu0 %v1008_v58, %s3239_s25 }
 0x9a9   :  { %1107 = vrot.lane.b32.xlu1 %v1105_v59, %s3239_s25 }
 0xa1a   :  { %v1011_v63 = vpop.permute.xlu0 %1010 }
 0xa1b   :  { %v1108_v1 = vpop.permute.xlu1 %1107  ;;  %v3539_v2 = vadd.f32 %v1011_v63, %v1003_v60 }
 0xa1c   :  { %v3541_v3 = vadd.f32 %v1108_v1, %v1100_v62 }
 0xa1d   :  { %3159 = vtanh.f32 %v3539_v2 }
 0xa1e   :  { %3161 = vtanh.f32 %v3541_v3 }
 0xa27   :  { %v3160_v52 = vpop.eup %3159 }
 0xa28   :  { %v3162_v5 = vpop.eup %3161  ;;  %1016 = vrot.lane.b32.xlu0 %v3160_v52, %s3239_s25  ;;  %v166_v52 = vadd.f32 %v3424_v53, %v3335_v13 }
 0xa29   :  { %1113 = vrot.lane.b32.xlu1 %v3162_v5, %s3239_s25 }
 0xa9a   :  { %v1017_v6 = vpop.permute.xlu0 %1016 }
 0xa9b   :  { %v1114_v7 = vpop.permute.xlu1 %1113  ;;  %v1019_v9 = vmul.f32 %v3156_v48, %v1017_v6 }
 0xa9c   :  { %v1116_v10 = vmul.f32 %v3158_v50, %v1114_v7 }
 0xa9d   :  { %1118 = vrot.lane.b32.xlu0 %v1019_v9, %s3240_s0 }
 0xa9e   :  { %1193 = vrot.lane.b32.xlu1 %v1116_v10, %s3240_s0 }
 0xb0f   :  { %v1119_v11 = vpop.permute.xlu0 %1118 }
 0xb10   :  { %v1194_v14 = vpop.permute.xlu1 %1193  ;;  %2792 = vmatmul.mubr.msk.f32.vlgmr.msra.gmra.mrb[16].mxu0 %vm201_vm2, %v1119_v11 }
 0xb11   :  { %2803 = vmatmul.mubr.msk.f32.vlgmr.msra.gmra.mrb[12].mxu1 %vm201_vm2, %v1194_v14  ;;  %3026 = vmatpush3.bf16.msra.mxu0 %v3309_v8 }
 0xb12   :  { %3027 = vmatprep.subr.bf16.mxu0 %v3236_v0  ;;  %2813 = vmatprep.mubr.msk.f32.mxu0 %vm3237_vm1, %v3238_v4 }
 0xb13   :  { %3032 = vmatpush3.bf16.msra.mxu1 %v3376_v40  ;;  %2824 = vmatprep.mubr.msk.f32.mxu1 %vm3237_vm1, %v3238_v4 }
 0xb14   :  { %3033 = vmatprep.subr.bf16.mxu1 %v3236_v0 }
 0xb15   :  { %3029 = vmatpush3.bf16.msra.mxu0 %v3322_v12 }
 0xb16   :  { %3036 = vmatprep.subr.bf16.mxu0 %v3236_v0 }
 0xb17   :  { %3035 = vmatpush3.bf16.msra.mxu1 %v3395_v46 }
 0xb18   :  { %2814 = vmatmul.mubr.msk.f32.vlgmr.msra.gmra.mrb[18].mxu0 %vm201_vm2, %v1194_v14  ;;  %3042 = vmatprep.subr.bf16.mxu1 %v3236_v0 }
 0xb19   :  { %3038 = vmatpush3.bf16.msra.mxu0 %v3364_v36  ;;  %2835 = vmatprep.mubr.msk.f32.mxu0 %vm3237_vm1, %v3238_v4 }
 0xb1a   :  { %3039 = vmatprep.subr.bf16.mxu0 %v3236_v0 }
 0xb1d   :  { %3041 = vmatpush3.bf16.msra.mxu0 %v3389_v44 }
 0xb1e   :  { %3048 = vmatprep.subr.bf16.mxu0 %v3236_v0 }
 0xbe3   :  { %v1188_v15 = vpop.f32.mrb[16].mxu0 }
 0xbe4   :  { %v1263_v16 = vpop.f32.mrb[12].mxu1  ;;  %v2793_v17 = vpop.f32.mrb[17].mxu0 }
 0xbe5   :  { %v1264_v18 = vadd.f32 %v1263_v16, %v1188_v15  ;;  %v2804_v19 = vpop.f32.mrb[13].mxu1 }
 0xbe7   :  { %v1267_v20 = vadd.f32 %v3451_v61, %v1264_v18 }
 0xbe9   :  { %3163 = vtanh.f32 %v1267_v20  ;;  %v2499_v27 = vmul.f32 -1.442695, %v1267_v20 }
 0xbeb   :  { %v1360_v22 = vpop.f32.mrb[18].mxu0 }
 0xbec   :  { %v1364_v23 = vadd.f32 %v1360_v22, %v161_v21  ;;  %v2815_v24 = vpop.f32.mrb[19].mxu0 }
 0xbee   :  { %3165 = vtanh.f32 %v1364_v23  ;;  %v2501_v28 = vmul.f32 -1.442695, %v1364_v23 }
 0xbef   :  { %3167 = vpow2.f32 %v2499_v27 }
 0xbf0   :  { %3169 = vpow2.f32 %v2501_v28 }
 0xbf3   :  { %v3164_v25 = vpop.eup %3163 }
 0xbf4   :  { %1277 = vrot.lane.b32.xlu0 %v3164_v25, %s3239_s25 }
 0xbf8   :  { %v3166_v26 = vpop.eup %3165 }
 0xbf9   :  { %1374 = vrot.lane.b32.xlu1 %v3166_v26, %s3239_s25  ;;  %v3168_v30 = vpop.eup %3167 }
 0xbfa   :  { %v1271_v31 = vadd.f32 1.0, %v3168_v30  ;;  %v3170_v32 = vpop.eup %3169 }
 0xbfb   :  { %v1368_v33 = vadd.f32 1.0, %v3170_v32 }
 0xbfc   :  { %3171 = vrcp.f32 %v1271_v31 }
 0xbfd   :  { %3173 = vrcp.f32 %v1368_v33 }
 0xc06   :  { %v3172_v54 = vpop.eup %3171 }
 0xc07   :  { %v3174_v35 = vpop.eup %3173  ;;  %v1275_v39 = vmul.f32 %v3172_v54, %v3539_v2 }
 0xc08   :  { %v1372_v51 = vmul.f32 %v3174_v35, %v3541_v3 }
 0xc66   :  { %v1278_v34 = vpop.permute.xlu0 %1277 }
 0xc67   :  { %v1280_v29 = vmul.f32 %v3172_v54, %v1278_v34 }
 0xc69   :  { %1282 = vrot.lane.b32.xlu0 %v1280_v29, %s3239_s25 }
 0xc6b   :  { %v1375_v37 = vpop.permute.xlu1 %1374 }
 0xc6c   :  { %v1377_v38 = vmul.f32 %v3174_v35, %v1375_v37 }
 0xc6e   :  { %1379 = vrot.lane.b32.xlu1 %v1377_v38, %s3239_s25 }
 0xcdb   :  { %v1283_v41 = vpop.permute.xlu0 %1282 }
 0xcdc   :  { %v3578_v42 = vadd.f32 %v1283_v41, %v1275_v39 }
 0xcde   :  { %3175 = vtanh.f32 %v3578_v42 }
 0xce0   :  { %v1380_v43 = vpop.permute.xlu1 %1379 }
 0xce1   :  { %v3582_v45 = vadd.f32 %v1380_v43, %v1372_v51 }
 0xce3   :  { %3177 = vtanh.f32 %v3582_v45 }
 0xce8   :  { %v3176_v47 = vpop.eup %3175 }
 0xce9   :  { %1288 = vrot.lane.b32.xlu0 %v3176_v47, %s3239_s25  ;;  %v171_v47 = vadd.f32 %v3335_v13, %v3430_v56 }
 0xced   :  { %v3178_v48 = vpop.eup %3177 }
 0xcee   :  { %1385 = vrot.lane.b32.xlu1 %v3178_v48, %s3239_s25 }
 0xd5b   :  { %v1289_v49 = vpop.permute.xlu0 %1288 }
 0xd5c   :  { %v1291_v50 = vmul.f32 %v3172_v54, %v1289_v49 }
 0xd5e   :  { %1390 = vrot.lane.b32.xlu0 %v1291_v50, %s3240_s0 }
 0xd60   :  { %v1386_v57 = vpop.permute.xlu1 %1385 }
 0xd61   :  { %v1388_v58 = vmul.f32 %v3174_v35, %v1386_v57 }
 0xd63   :  { %1465 = vrot.lane.b32.xlu1 %v1388_v58, %s3240_s0 }
 0xdd0   :  { %v1391_v59 = vpop.permute.xlu0 %1390 }
 0xdd1   :  { %2825 = vmatmul.mubr.msk.f32.vlgmr.msra.gmra.mrb[14].mxu1 %vm201_vm2, %v1391_v59 }
 0xdd2   :  { %3044 = vmatpush3.bf16.msra.mxu1 %v3309_v8  ;;  %2846 = vmatprep.mubr.msk.f32.mxu1 %vm3237_vm1, %v3238_v4 }
 0xdd3   :  { %3045 = vmatprep.subr.bf16.mxu1 %v3236_v0 }
 0xdd5   :  { %v1466_v60 = vpop.permute.xlu1 %1465 }
 0xdd6   :  { %3047 = vmatpush3.bf16.msra.mxu1 %v3322_v12  ;;  %2836 = vmatmul.mubr.msk.f32.vlgmr.msra.gmra.mrb[20].mxu0 %vm201_vm2, %v1466_v60 }
 0xdd7   :  { %3050 = vmatpush3.bf16.msra.mxu0 %v3376_v40  ;;  %3054 = vmatprep.subr.bf16.mxu1 %v3236_v0 }
 0xdd8   :  { %3051 = vmatprep.subr.bf16.mxu0 %v3236_v0  ;;  %2857 = vmatprep.mubr.msk.f32.mxu0 %vm3237_vm1, %v3238_v4 }
 0xdd9   :  { %2847 = vmatmul.mubr.msk.f32.vlgmr.msra.gmra.mrb[16].mxu1 %vm201_vm2, %v1466_v60 }
 0xdda   :  { %3056 = vmatpush3.bf16.msra.mxu1 %v3364_v36  ;;  %2868 = vmatprep.mubr.msk.f32.mxu1 %vm3237_vm1, %v3238_v4 }
 0xddb   :  { %3053 = vmatpush3.bf16.msra.mxu0 %v3395_v46  ;;  %3057 = vmatprep.subr.bf16.mxu1 %v3236_v0 }
 0xddc   :  { %3060 = vmatprep.subr.bf16.mxu0 %v3236_v0 }
 0xdde   :  { %3059 = vmatpush3.bf16.msra.mxu1 %v3389_v44 }
 0xddf   :  { %3066 = vmatprep.subr.bf16.mxu1 %v3236_v0 }
 0xea4   :  { %v1460_v62 = vpop.f32.mrb[14].mxu1 }
 0xea5   :  { %v2826_v63 = vpop.f32.mrb[15].mxu1 }
 0xea9   :  { %v1535_v1 = vpop.f32.mrb[20].mxu0 }
 0xeaa   :  { %v1536_v2 = vadd.f32 %v1535_v1, %v1460_v62  ;;  %v2837_v3 = vpop.f32.mrb[21].mxu0 }
 0xeac   :  { %v1539_v5 = vadd.f32 %v3451_v61, %v1536_v2  ;;  %v1632_v6 = vpop.f32.mrb[16].mxu1 }
 0xead   :  { %v1636_v7 = vadd.f32 %v1632_v6, %v166_v52  ;;  %v2848_v9 = vpop.f32.mrb[17].mxu1 }
 0xeae   :  { %3179 = vtanh.f32 %v1539_v5  ;;  %v2504_v14 = vmul.f32 -1.442695, %v1539_v5 }
 0xeaf   :  { %3181 = vtanh.f32 %v1636_v7  ;;  %v2506_v15 = vmul.f32 -1.442695, %v1636_v7 }
 0xeb0   :  { %3183 = vpow2.f32 %v2504_v14 }
 0xeb1   :  { %3185 = vpow2.f32 %v2506_v15 }
 0xeb8   :  { %v3180_v10 = vpop.eup %3179 }
 0xeb9   :  { %v3182_v11 = vpop.eup %3181  ;;  %1549 = vrot.lane.b32.xlu0 %v3180_v10, %s3239_s25 }
 0xeba   :  { %1646 = vrot.lane.b32.xlu1 %v3182_v11, %s3239_s25  ;;  %v3184_v16 = vpop.eup %3183 }
 0xebb   :  { %v3186_v17 = vpop.eup %3185  ;;  %v1543_v53 = vadd.f32 1.0, %v3184_v16 }
 0xebc   :  { %v1640_v18 = vadd.f32 1.0, %v3186_v17 }
 0xebd   :  { %3187 = vrcp.f32 %v1543_v53 }
 0xebe   :  { %3189 = vrcp.f32 %v1640_v18 }
 0xec7   :  { %v3188_v19 = vpop.eup %3187 }
 0xec8   :  { %v3190_v21 = vpop.eup %3189  ;;  %v1547_v25 = vmul.f32 %v3188_v19, %v3578_v42 }
 0xec9   :  { %v1644_v26 = vmul.f32 %v3190_v21, %v3582_v45 }
 0xf2b   :  { %v1550_v20 = vpop.permute.xlu0 %1549 }
 0xf2c   :  { %v1647_v22 = vpop.permute.xlu1 %1646  ;;  %v1552_v23 = vmul.f32 %v3188_v19, %v1550_v20 }
 0xf2d   :  { %v1649_v24 = vmul.f32 %v3190_v21, %v1647_v22 }
 0xf2e   :  { %1554 = vrot.lane.b32.xlu0 %v1552_v23, %s3239_s25 }
 0xf2f   :  { %1651 = vrot.lane.b32.xlu1 %v1649_v24, %s3239_s25 }
 0xfa0   :  { %v1555_v27 = vpop.permute.xlu0 %1554 }
 0xfa1   :  { %v1652_v28 = vpop.permute.xlu1 %1651  ;;  %v3619_v30 = vadd.f32 %v1555_v27, %v1547_v25 }
 0xfa2   :  { %v3621_v31 = vadd.f32 %v1652_v28, %v1644_v26 }
 0xfa3   :  { %3191 = vtanh.f32 %v3619_v30 }
 0xfa4   :  { %3193 = vtanh.f32 %v3621_v31 }
 0xfad   :  { %v3192_v32 = vpop.eup %3191 }
 0xfae   :  { %v3194_v33 = vpop.eup %3193  ;;  %1560 = vrot.lane.b32.xlu0 %v3192_v32, %s3239_s25 }
 0xfaf   :  { %1657 = vrot.lane.b32.xlu1 %v3194_v33, %s3239_s25 }
0x1020   :  { %v1561_v54 = vpop.permute.xlu0 %1560 }
0x1021   :  { %v1658_v34 = vpop.permute.xlu1 %1657  ;;  %v1563_v29 = vmul.f32 %v3188_v19, %v1561_v54 }
0x1022   :  { %v1660_v35 = vmul.f32 %v3190_v21, %v1658_v34 }
0x1023   :  { %1662 = vrot.lane.b32.xlu0 %v1563_v29, %s3240_s0 }
0x1024   :  { %1737 = vrot.lane.b32.xlu1 %v1660_v35, %s3240_s0 }
0x1095   :  { %v1663_v37 = vpop.permute.xlu0 %1662 }
0x1096   :  { %v1738_v38 = vpop.permute.xlu1 %1737  ;;  %2858 = vmatmul.mubr.msk.f32.vlgmr.msra.gmra.mrb[22].mxu0 %vm201_vm2, %v1663_v37 }
0x1097   :  { %2869 = vmatmul.mubr.msk.f32.vlgmr.msra.gmra.mrb[18].mxu1 %vm201_vm2, %v1738_v38  ;;  %3062 = vmatpush3.bf16.msra.mxu0 %v3309_v8 }
0x1098   :  { %3063 = vmatprep.subr.bf16.mxu0 %v3236_v0  ;;  %2879 = vmatprep.mubr.msk.f32.mxu0 %vm3237_vm1, %v3238_v4 }
0x1099   :  { %3068 = vmatpush3.bf16.msra.mxu1 %v3376_v40  ;;  %2890 = vmatprep.mubr.msk.f32.mxu1 %vm3237_vm1, %v3238_v4 }
0x109a   :  { %3069 = vmatprep.subr.bf16.mxu1 %v3236_v0 }
0x109b   :  { %3065 = vmatpush3.bf16.msra.mxu0 %v3322_v12 }
0x109c   :  { %3072 = vmatprep.subr.bf16.mxu0 %v3236_v0 }
0x109d   :  { %3071 = vmatpush3.bf16.msra.mxu1 %v3395_v46 }
0x109e   :  { %2880 = vmatmul.mubr.msk.f32.vlgmr.msra.gmra.mrb[24].mxu0 %vm201_vm2, %v1738_v38  ;;  %3078 = vmatprep.subr.bf16.mxu1 %v3236_v0 }
0x109f   :  { %3074 = vmatpush3.bf16.msra.mxu0 %v3364_v36  ;;  %2901 = vmatprep.mubr.msk.f32.mxu0 %vm3237_vm1, %v3238_v4 }
0x10a0   :  { %3075 = vmatprep.subr.bf16.mxu0 %v3236_v0 }
0x10a3   :  { %3077 = vmatpush3.bf16.msra.mxu0 %v3389_v44 }
0x10a4   :  { %3084 = vmatprep.subr.bf16.mxu0 %v3236_v0 }
0x1169   :  { %v1732_v39 = vpop.f32.mrb[22].mxu0 }
0x116a   :  { %v1807_v41 = vpop.f32.mrb[18].mxu1  ;;  %v2859_v42 = vpop.f32.mrb[23].mxu0 }
0x116b   :  { %v1808_v51 = vadd.f32 %v1807_v41, %v1732_v39  ;;  %v2870_v43 = vpop.f32.mrb[19].mxu1 }
0x116d   :  { %v1811_v45 = vadd.f32 %v3451_v61, %v1808_v51 }
0x116f   :  { %3195 = vtanh.f32 %v1811_v45  ;;  %v2509_v59 = vmul.f32 -1.442695, %v1811_v45 }
0x1171   :  { %v1904_v48 = vpop.f32.mrb[24].mxu0 }
0x1172   :  { %v1908_v49 = vadd.f32 %v1904_v48, %v171_v47  ;;  %v2881_v50 = vpop.f32.mrb[25].mxu0 }
0x1174   :  { %3197 = vtanh.f32 %v1908_v49  ;;  %v2511_v60 = vmul.f32 -1.442695, %v1908_v49 }
0x1175   :  { %3199 = vpow2.f32 %v2509_v59 }
0x1176   :  { %3201 = vpow2.f32 %v2511_v60 }
0x1179   :  { %v3196_v57 = vpop.eup %3195 }
0x117a   :  { %1821 = vrot.lane.b32.xlu0 %v3196_v57, %s3239_s25 }
0x117e   :  { %v3198_v58 = vpop.eup %3197 }
0x117f   :  { %1918 = vrot.lane.b32.xlu1 %v3198_v58, %s3239_s25  ;;  %v3200_v62 = vpop.eup %3199 }
0x1180   :  { %v1815_v63 = vadd.f32 1.0, %v3200_v62  ;;  %v3202_v1 = vpop.eup %3201 }
0x1181   :  { %v1912_v2 = vadd.f32 1.0, %v3202_v1 }
0x1182   :  { %3203 = vrcp.f32 %v1815_v63 }
0x1183   :  { %3205 = vrcp.f32 %v1912_v2 }
0x118c   :  { %v3204_v13 = vpop.eup %3203 }
0x118d   :  { %v3206_v52 = vpop.eup %3205  ;;  %v1819_v7 = vmul.f32 %v3204_v13, %v3619_v30 }
0x118e   :  { %v1916_v11 = vmul.f32 %v3206_v52, %v3621_v31 }
0x11ec   :  { %v1822_v56 = vpop.permute.xlu0 %1821 }
0x11ed   :  { %v1824_v3 = vmul.f32 %v3204_v13, %v1822_v56 }
0x11ef   :  { %1826 = vrot.lane.b32.xlu0 %v1824_v3, %s3239_s25 }
0x11f1   :  { %v1919_v5 = vpop.permute.xlu1 %1918 }
0x11f2   :  { %v1921_v6 = vmul.f32 %v3206_v52, %v1919_v5 }
0x11f4   :  { %1923 = vrot.lane.b32.xlu1 %v1921_v6, %s3239_s25 }
0x1261   :  { %v1827_v9 = vpop.permute.xlu0 %1826 }
0x1262   :  { %v3658_v10 = vadd.f32 %v1827_v9, %v1819_v7 }
0x1264   :  { %3207 = vtanh.f32 %v3658_v10 }
0x1266   :  { %v1924_v14 = vpop.permute.xlu1 %1923 }
0x1267   :  { %v3662_v15 = vadd.f32 %v1924_v14, %v1916_v11 }
0x1269   :  { %3209 = vtanh.f32 %v3662_v15 }
0x126e   :  { %v3208_v16 = vpop.eup %3207 }
0x126f   :  { %1832 = vrot.lane.b32.xlu0 %v3208_v16, %s3239_s25 }
0x1273   :  { %v3210_v17 = vpop.eup %3209 }
0x1274   :  { %1929 = vrot.lane.b32.xlu1 %v3210_v17, %s3239_s25  ;;  %v2381_v17 = vld [vmem:[%s3740_s7 + $0x8] sm:$0xff] }
0x12e1   :  { %v1833_v53 = vpop.permute.xlu0 %1832 }
0x12e2   :  { %v1835_v18 = vmul.f32 %v3204_v13, %v1833_v53  ;;  %v2382_v53 = vld [vmem:[%s3740_s7 + $0x10] sm:$0xff] }
0x12e4   :  { %1934 = vrot.lane.b32.xlu0 %v1835_v18, %s3240_s0 }
0x12e6   :  { %v1930_v19 = vpop.permute.xlu1 %1929 }
0x12e7   :  { %v1932_v20 = vmul.f32 %v3206_v52, %v1930_v19  ;;  %v2383_v19 = vld [vmem:[%s3740_s7 + $0x18] sm:$0xff] }
0x12e9   :  { %2009 = vrot.lane.b32.xlu1 %v1932_v20, %s3240_s0  ;;  %v3100_v20 = vpack.c.bf16 %v2383_v19, %v2382_v53 }
0x1356   :  { %v1935_v21 = vpop.permute.xlu0 %1934 }
0x1357   :  { %2891 = vmatmul.mubr.msk.f32.vlgmr.msra.gmra.mrb[20].mxu1 %vm201_vm2, %v1935_v21 }
0x1358   :  { %3080 = vmatpush3.bf16.msra.mxu1 %v3309_v8  ;;  %2912 = vmatprep.mubr.msk.f32.mxu1 %vm3237_vm1, %v3238_v4 }
0x1359   :  { %3081 = vmatprep.subr.bf16.mxu1 %v3236_v0 }
0x135b   :  { %v2010_v22 = vpop.permute.xlu1 %2009 }
0x135c   :  { %3083 = vmatpush3.bf16.msra.mxu1 %v3322_v12  ;;  %2902 = vmatmul.mubr.msk.f32.vlgmr.msra.gmra.mrb[26].mxu0 %vm201_vm2, %v2010_v22 }
0x135d   :  { %3090 = vmatprep.subr.bf16.mxu1 %v3236_v0  ;;  %3086 = vmatpush3.bf16.msra.mxu0 %v3376_v40 }
0x135e   :  { %3087 = vmatprep.subr.bf16.mxu0 %v3236_v0  ;;  %2923 = vmatprep.mubr.msk.f32.mxu0 %vm3237_vm1, %v3238_v4 }
0x135f   :  { %2913 = vmatmul.mubr.msk.f32.vlgmr.msra.gmra.mrb[22].mxu1 %vm201_vm2, %v2010_v22 }
0x1360   :  { %3092 = vmatpush3.bf16.msra.mxu1 %v3364_v36  ;;  %2934 = vmatprep.mubr.msk.f32.mxu1 %vm3237_vm1, %v3238_v4  ;;  %v3235_v36 = vld [vmem:[%s3736_s3] ss:$0 sm:$0xff] }
0x1361   :  { %3093 = vmatprep.subr.bf16.mxu1 %v3236_v0  ;;  %3089 = vmatpush3.bf16.msra.mxu0 %v3395_v46  ;;  %v176_v25 = vadd.f32 %v3235_v36, %v3428_v55 }
0x1362   :  { %3096 = vmatprep.subr.bf16.mxu0 %v3236_v0 }
0x1364   :  { %3095 = vmatpush3.bf16.msra.mxu1 %v3389_v44 }
0x142a   :  { %v2004_v8 = vpop.f32.mrb[20].mxu1 }
0x142b   :  { %v2892_v12 = vpop.f32.mrb[21].mxu1 }
0x142f   :  { %v2079_v40 = vpop.f32.mrb[26].mxu0 }
0x1430   :  { %v2080_v23 = vadd.f32 %v2079_v40, %v2004_v8  ;;  %v2903_v24 = vpop.f32.mrb[27].mxu0  ;;  %v2520_v40 = vld [vmem:[%s3741_s8] ss:$0 sm:$0xff] }
0x1432   :  { %v2083_v26 = vadd.f32 %v3451_v61, %v2080_v23  ;;  %v2176_v27 = vpop.f32.mrb[22].mxu1 }
0x1433   :  { %v2180_v28 = vadd.f32 %v2176_v27, %v176_v25  ;;  %v2914_v46 = vpop.f32.mrb[23].mxu1 }
0x1434   :  { %3211 = vtanh.f32 %v2083_v26  ;;  %v2514_v31 = vmul.f32 -1.442695, %v2083_v26 }
0x1435   :  { %3213 = vtanh.f32 %v2180_v28  ;;  %v2516_v32 = vmul.f32 -1.442695, %v2180_v28 }
0x1436   :  { %3215 = vpow2.f32 %v2514_v31 }
0x1437   :  { %3217 = vpow2.f32 %v2516_v32 }
0x143e   :  { %v3212_v30 = vpop.eup %3211 }
0x143f   :  { %v3214_v44 = vpop.eup %3213  ;;  %2093 = vrot.lane.b32.xlu0 %v3212_v30, %s3239_s25 }
0x1440   :  { %2190 = vrot.lane.b32.xlu1 %v3214_v44, %s3239_s25  ;;  %v3216_v33 = vpop.eup %3215 }
0x1441   :  { %v3218_v54 = vpop.eup %3217  ;;  %v2087_v55 = vadd.f32 1.0, %v3216_v33 }
0x1442   :  { %v2184_v34 = vadd.f32 1.0, %v3218_v54 }
0x1443   :  { %3219 = vrcp.f32 %v2087_v55 }
0x1444   :  { %3221 = vrcp.f32 %v2184_v34 }
0x144d   :  { %v3220_v29 = vpop.eup %3219 }
0x144e   :  { %v3222_v37 = vpop.eup %3221  ;;  %v2091_v42 = vmul.f32 %v3220_v29, %v3658_v10 }
0x144f   :  { %v2188_v51 = vmul.f32 %v3222_v37, %v3662_v15 }
0x14b1   :  { %v2094_v35 = vpop.permute.xlu0 %2093 }
0x14b2   :  { %v2191_v38 = vpop.permute.xlu1 %2190  ;;  %v2096_v39 = vmul.f32 %v3220_v29, %v2094_v35 }
0x14b3   :  { %v2193_v41 = vmul.f32 %v3222_v37, %v2191_v38 }
0x14b4   :  { %2098 = vrot.lane.b32.xlu0 %v2096_v39, %s3239_s25 }
0x14b5   :  { %2195 = vrot.lane.b32.xlu1 %v2193_v41, %s3239_s25 }
0x1526   :  { %v2099_v43 = vpop.permute.xlu0 %2098 }
0x1527   :  { %v2196_v45 = vpop.permute.xlu1 %2195  ;;  %v2101_v47 = vadd.f32 %v2099_v43, %v2091_v42 }
0x1528   :  { %v2198_v48 = vadd.f32 %v2196_v45, %v2188_v51 }
0x1529   :  { %3223 = vtanh.f32 %v2101_v47 }
0x152a   :  { %3225 = vtanh.f32 %v2198_v48 }
0x1533   :  { %v3224_v49 = vpop.eup %3223 }
0x1534   :  { %v3226_v50 = vpop.eup %3225  ;;  %2104 = vrot.lane.b32.xlu0 %v3224_v49, %s3239_s25 }
0x1535   :  { %2201 = vrot.lane.b32.xlu1 %v3226_v50, %s3239_s25 }
0x15a6   :  { %v2105_v57 = vpop.permute.xlu0 %2104 }
0x15a7   :  { %v2202_v58 = vpop.permute.xlu1 %2201  ;;  %v2107_v59 = vmul.f32 %v3220_v29, %v2105_v57 }
0x15a8   :  { %v2204_v60 = vmul.f32 %v3222_v37, %v2202_v58 }
0x15a9   :  { %2206 = vrot.lane.b32.xlu0 %v2107_v59, %s3240_s0 }
0x15aa   :  { %2281 = vrot.lane.b32.xlu1 %v2204_v60, %s3240_s0 }
0x161b   :  { %v2207_v62 = vpop.permute.xlu0 %2206 }
0x161c   :  { %v2282_v63 = vpop.permute.xlu1 %2281  ;;  %2924 = vmatmul.mubr.msk.f32.vlgmr.msra.gmra.mrb[28].mxu0 %vm201_vm2, %v2207_v62 }
0x161d   :  { %2935 = vmatmul.mubr.msk.f32.vlgmr.msra.gmra.mrb[24].mxu1 %vm201_vm2, %v2282_v63  ;;  %2945 = vmatprep.mubr.msk.f32.mxu0 %vm3237_vm1, %v3238_v4 }
0x16ef   :  { %v2276_v1 = vpop.f32.mrb[28].mxu0 }
0x16f0   :  { %v2351_v2 = vpop.f32.mrb[24].mxu1  ;;  %v2925_v13 = vpop.f32.mrb[29].mxu0 }
0x16f1   :  { %v2352_v56 = vadd.f32 %v2351_v2, %v2276_v1  ;;  %v2936_v3 = vpop.f32.mrb[25].mxu1 }
0x16f3   :  { %v2355_v52 = vadd.f32 %v3451_v61, %v2352_v56  ;;  %v2380_v61 = vld [vmem:[%s3740_s7] sm:$0xff] }
0x16f4   :  { %v3097_v18 = vpack.c.bf16 %v2381_v17, %v2380_v61 }
0x16f5   :  { %3227 = vtanh.f32 %v2355_v52  ;;  %v2519_v6 = vmul.f32 -1.442695, %v2355_v52 }
0x16f6   :  { %3098 = vmatpush3.bf16.msra.mxu0 %v3097_v18 }
0x16f7   :  { %3229 = vpow2.f32 %v2519_v6  ;;  %3099 = vmatprep.subr.bf16.mxu0 %v3236_v0 }
0x16fa   :  { %3101 = vmatpush3.bf16.msra.mxu0 %v3100_v20 }
0x16ff   :  { %v3228_v5 = vpop.eup %3227 }
0x1700   :  { %2365 = vrot.lane.b32.xlu0 %v3228_v5, %s3239_s25 }
0x1701   :  { %v3230_v7 = vpop.eup %3229 }
0x1702   :  { %v2359_v9 = vadd.f32 1.0, %v3230_v7 }
0x1704   :  { %3231 = vrcp.f32 %v2359_v9 }
0x170e   :  { %v3232_v10 = vpop.eup %3231 }
0x170f   :  { %v2363_v4 = vmul.f32 %v3232_v10, %v2101_v47 }
0x1772   :  { %v2366_v11 = vpop.permute.xlu0 %2365 }
0x1773   :  { %v2368_v14 = vmul.f32 %v3232_v10, %v2366_v11 }
0x1775   :  { %2370 = vrot.lane.b32.xlu1 %v2368_v14, %s3239_s25 }
0x17e7   :  { %v2371_v15 = vpop.permute.xlu1 %2370 }
0x17e8   :  { %v2373_v16 = vadd.f32 %v2371_v15, %v2363_v4 }
0x17ea   :  { %3233 = vtanh.f32 %v2373_v16 }
0x17f4   :  { %v3234_v21 = vpop.eup %3233 }
0x17f5   :  { %2376 = vrot.lane.b32.xlu0 %v3234_v21, %s3239_s25 }
0x1867   :  { %v2377_v22 = vpop.permute.xlu0 %2376 }
0x1868   :  { %v2379_v8 = vmul.f32 %v3232_v10, %v2377_v22 }
0x186a   :  { %2392 = vrot.lane.b32.xlu1 %v2379_v8, %s3240_s0 }
0x18dc   :  { %v2393_v12 = vpop.permute.xlu1 %2392 }
0x18dd   :  { %2946 = vmatmul.mubr.msk.f32.vlgmr.msra.gmra.mrb[30].mxu0 %vm201_vm2, %v2393_v12 }
0x19b0   :  { %v2462_v23 = vpop.f32.mrb[30].mxu0 }
0x19b1   :  { %v2463_v24 = vadd.f32 %v2520_v40, %v2462_v23  ;;  %v2947_v36 = vpop.f32.mrb[31].mxu0 }
0x19b3   :  { %2467 = vst.msk [vmem:[%s3742_s9] sm:$0xff] %vm2466_vm3, %v2463_v24 }

</bundles_post_ra>
